<compile_context>
chip_gen: v5e
topology: v5e:2x2
jax: 0.10.0
libtpu: 0.0.40
codegen_flags: <defaults>
</compile_context>

<pallas_src>
import functools
import math

import jax
import jax.numpy as jnp
from jax import lax
from jax.experimental import pallas as pl
from jax.experimental.pallas import tpu as pltpu


# ---------------------------------------------------------------------------
# Fused kernel: whole adaLN-Zero block for `bb` complete sequences per step.
# ---------------------------------------------------------------------------
def fused_adaln_block_kernel(x_ref, c_ref,
                             wada_ref, bada_ref,
                             wqkv_ref, bqkv_ref,
                             wo_ref, bo_ref,
                             w1_ref, b1_ref,
                             w2_ref, b2_ref,
                             o_ref, *, num_heads):
    bb, T, D = x_ref.shape
    H = num_heads
    hd = D // H
    N = bb * T
    scale = 1.0 / math.sqrt(hd)
    w_dtype = wada_ref.dtype  # matmul operand dtype (bf16 for production)

    x = x_ref[...].astype(jnp.float32).reshape(N, D)
    c = c_ref[...].astype(jnp.float32).reshape(N, D)

    def layer_norm(z):  # no affine, eps=1e-6, f32 math
        m = jnp.mean(z, axis=-1, keepdims=True)
        zc = z - m
        v = jnp.mean(zc * zc, axis=-1, keepdims=True)
        return zc * lax.rsqrt(v + 1e-6)

    # ---- adaLN_modulation: SiLU(cond) @ W_ada + b_ada.  Single MXU dot; the
    # six chunks are value slices of the f32 result (no weight-ref slicing).
    silu_c = (c * jax.nn.sigmoid(c)).astype(w_dtype)
    mod = (jnp.dot(silu_c, wada_ref[...], preferred_element_type=jnp.float32)
           + bada_ref[...])
    shift_msa = mod[:, 0 * D:1 * D]
    scale_msa = mod[:, 1 * D:2 * D]
    gate_msa = mod[:, 2 * D:3 * D]
    shift_mlp = mod[:, 3 * D:4 * D]
    scale_mlp = mod[:, 4 * D:5 * D]
    gate_mlp = mod[:, 5 * D:6 * D]

    # ---- LayerNorm1 + modulate + fused QKV projection: (N, D) @ (D, 3D).
    moduln = (layer_norm(x) * (1.0 + scale_msa) + shift_msa).astype(w_dtype)
    qkv = (jnp.dot(moduln, wqkv_ref[...], preferred_element_type=jnp.float32)
           + bqkv_ref[...])

    q = qkv[:, 0 * D:1 * D].reshape(bb, T, D)
    k = qkv[:, 1 * D:2 * D].reshape(bb, T, D)
    v = qkv[:, 2 * D:3 * D].reshape(bb, T, D)

    # ---- Per-head scaled dot-product attention, fully in VMEM/registers.
    # Static Python loop over heads: each step is a batched dot_general with a
    # single leading batch dim (the pattern Mosaic lowers cleanly).
    head_outs = []
    for h in range(H):
        qh = q[:, :, h * hd:(h + 1) * hd]
        kh = k[:, :, h * hd:(h + 1) * hd]
        vh = v[:, :, h * hd:(h + 1) * hd]
        s = jnp.einsum('bqd,bkd->bqk', qh, kh,
                       preferred_element_type=jnp.float32) * scale
        s = s - jnp.max(s, axis=-1, keepdims=True)
        p = jnp.exp(s)
        # NOTE: pl.reciprocal(..., approx=True) would move this divide to the
        # EUP slot; kept exact here to hold tight agreement with the reference.
        p = p / jnp.sum(p, axis=-1, keepdims=True)
        head_outs.append(jnp.einsum('bqk,bkd->bqd', p, vh,
                                    preferred_element_type=jnp.float32))
    attn = jnp.concatenate(head_outs, axis=-1).reshape(N, D)

    # ---- Output projection + adaLN-Zero gated residual.
    attn_proj = (jnp.dot(attn.astype(w_dtype), wo_ref[...],
                         preferred_element_type=jnp.float32) + bo_ref[...])
    x1 = x + gate_msa * attn_proj

    # ---- LayerNorm2 + modulate + MLP + gated residual.
    y = (layer_norm(x1) * (1.0 + scale_mlp) + shift_mlp).astype(w_dtype)
    # TODO(synk): PyTorch nn.GELU() default is exact (erf) GELU; the tanh
    # approximation is used here to stay on guaranteed Mosaic lowerings.
    h1 = (jnp.dot(y, w1_ref[...], preferred_element_type=jnp.float32)
          + b1_ref[...])
    h1 = jax.nn.gelu(h1, approximate=True).astype(w_dtype)
    mlp = (jnp.dot(h1, w2_ref[...], preferred_element_type=jnp.float32)
           + b2_ref[...])

    o_ref[...] = (x1 + gate_mlp * mlp).reshape(bb, T, D).astype(o_ref.dtype)


# ---------------------------------------------------------------------------
# Wrapper helpers
# ---------------------------------------------------------------------------
def _pick_batches_per_tile(B, T, tile_rows):
    """Largest divisor of B whose row count fits tile_rows; >=2 grid steps."""
    bb = max(1, min(B, max(1, tile_rows // T)))
    while B % bb:
        bb -= 1
    # Ensure the row grid has >= 2 steps so both v7x TensorCores get work.
    if B // bb < 2 and B >= 2:
        nb = bb // 2
        while nb >= 1 and B % nb:
            nb -= 1
        if nb >= 1:
            bb = nb
    return bb


def _vmem_limit_bytes():
    """VMEM budget with headroom; never the full physical capacity."""
    try:
        cap = int(pltpu.get_tpu_info().vmem_capacity_bytes)
    except Exception:
        cap = 64 * 1024 * 1024  # conservative (v7x per-TC size)
    return int(max(32 * 1024 * 1024, min(cap * 3 // 4, 100 * 1024 * 1024)))


# ---------------------------------------------------------------------------
# Wrapper
# ---------------------------------------------------------------------------
def gpt_adaln_block(x, cond, params, *, num_heads, tile_rows=256,
                    weight_dtype=None):
    """Forward pass of GPT_AdaLn_Block as a single fused Pallas kernel.

    x, cond: (B, T, D).  Weights are pre-transposed to (in, out) layout:
      w_ada_t (D, 6D), w_qkv_t (D, 3D) = [Wq^T | Wk^T | Wv^T],
      w_o_t (D, D), w1_t (D, dim_ff), w2_t (dim_ff, D); biases 1-D.
    weight_dtype: e.g. jnp.bfloat16 to run matmuls in bf16 (f32 accumulation).
    tile_rows: target rows per grid step (raise to 512-1024 on v5e/v6e).
    """
    B, T, D = x.shape
    assert cond.shape == (B, T, D)
    assert D % num_heads == 0
    dff = params["w1_t"].shape[1]

    def wcast(w):
        return w.astype(weight_dtype) if weight_dtype is not None else w

    w_ada = wcast(params["w_ada_t"])
    w_qkv = wcast(params["w_qkv_t"])
    w_o = wcast(params["w_o_t"])
    w1 = wcast(params["w1_t"])
    w2 = wcast(params["w2_t"])
    # Biases stay f32 (added after the f32 accumulation).
    b_ada = params["b_ada"].reshape(1, 6 * D).astype(jnp.float32)
    b_qkv = params["b_qkv"].reshape(1, 3 * D).astype(jnp.float32)
    b_o = params["b_o"].reshape(1, D).astype(jnp.float32)
    b1 = params["b1"].reshape(1, dff).astype(jnp.float32)
    b2 = params["b2"].reshape(1, D).astype(jnp.float32)

    bb = _pick_batches_per_tile(B, T, tile_rows)
    grid = (B // bb,)

    cparams = pltpu.CompilerParams(
        dimension_semantics=("parallel",),
        vmem_limit_bytes=_vmem_limit_bytes(),
    )
    kernel = functools.partial(fused_adaln_block_kernel, num_heads=num_heads)

    def run(single_buffer_weights):
        def wspec(shape):
            imap = lambda i: (0,) * len(shape)
            if single_buffer_weights:
                # Constant-index weights never change block -> no double buffer.
                return pl.BlockSpec(shape, imap, pipeline_mode=pl.Buffered(1))
            return pl.BlockSpec(shape, imap)

        grid_spec = pltpu.PrefetchScalarGridSpec(
            num_scalar_prefetch=0,
            grid=grid,
            in_specs=[
                pl.BlockSpec((bb, T, D), lambda i: (i, 0, 0)),   # x
                pl.BlockSpec((bb, T, D), lambda i: (i, 0, 0)),   # cond
                wspec((D, 6 * D)), wspec((1, 6 * D)),            # adaLN W, b
                wspec((D, 3 * D)), wspec((1, 3 * D)),            # QKV W, b
                wspec((D, D)), wspec((1, D)),                    # W_O, b_O
                wspec((D, dff)), wspec((1, dff)),                # fc1 W, b
                wspec((dff, D)), wspec((1, D)),                  # fc2 W, b
            ],
            out_specs=pl.BlockSpec((bb, T, D), lambda i: (i, 0, 0)),
        )
        return pl.pallas_call(
            kernel,
            out_shape=jax.ShapeDtypeStruct((B, T, D), x.dtype),
            grid_spec=grid_spec,
            compiler_params=cparams,
        )(x, cond, w_ada, b_ada, w_qkv, b_qkv, w_o, b_o, w1, b1, w2, b2)

    try:
        return run(True)           # single-buffered weights (preferred)
    except Exception:
        return run(False)          # fallback if Buffered(1) is unsupported


# ---------------------------------------------------------------------------
# Pure-JAX reference of the PyTorch forward (same tanh-GELU as the kernel).
# ---------------------------------------------------------------------------
def reference(x, cond, params, *, num_heads):
    B, T, D = x.shape
    hd = D // num_heads

    def layer_norm(z):
        m = jnp.mean(z, axis=-1, keepdims=True)
        v = jnp.mean((z - m) ** 2, axis=-1, keepdims=True)
        return (z - m) * lax.rsqrt(v + 1e-6)

    silu = cond * jax.nn.sigmoid(cond)
    mod = silu @ params["w_ada_t"] + params["b_ada"]
    (shift_msa, scale_msa, gate_msa,
     shift_mlp, scale_mlp, gate_mlp) = jnp.split(mod, 6, axis=-1)

    moduln = layer_norm(x) * (1 + scale_msa) + shift_msa
    qkv = moduln @ params["w_qkv_t"] + params["b_qkv"]
    q, k, v = jnp.split(qkv, 3, axis=-1)

    def split_heads(z):
        return z.reshape(B, T, num_heads, hd).transpose(0, 2, 1, 3)

    qh, kh, vh = split_heads(q), split_heads(k), split_heads(v)
    scores = jnp.einsum("bhqd,bhkd->bhqk", qh, kh) / jnp.sqrt(jnp.float32(hd))
    probs = jax.nn.softmax(scores, axis=-1)
    att = jnp.einsum("bhqk,bhkd->bhqd", probs, vh)
    att = att.transpose(0, 2, 1, 3).reshape(B, T, D)
    attn_out = att @ params["w_o_t"] + params["b_o"]

    x1 = x + gate_msa * attn_out
    y = layer_norm(x1) * (1 + scale_mlp) + shift_mlp
    h = jax.nn.gelu(y @ params["w1_t"] + params["b1"], approximate=True)
    mlp_out = h @ params["w2_t"] + params["b2"]
    return x1 + gate_mlp * mlp_out


if __name__ == "__main__":
    # Small deterministic shapes: batch=2, agents(seq)=8, model_dim=32,
    # heads=4, dim_ff=64.  (`dropout` is unused by the module's forward.)
    B, T, D, H, DFF = 2, 8, 32, 4, 64

    key = jax.random.PRNGKey(0)
    ks = jax.random.split(key, 16)

    x = jax.random.normal(ks[0], (B, T, D), dtype=jnp.float32)
    cond = jax.random.normal(ks[1], (B, T, D), dtype=jnp.float32)

    def w(k, shape, s=0.1):
        return s * jax.random.normal(k, shape, dtype=jnp.float32)

    params = dict(
        w_ada_t=w(ks[2], (D, 6 * D)),
        b_ada=w(ks[3], (6 * D,), 0.02),
        w_qkv_t=jnp.concatenate(
            [w(ks[4], (D, D)), w(ks[5], (D, D)), w(ks[6], (D, D))], axis=1),
        b_qkv=w(ks[7], (3 * D,), 0.02),
        w_o_t=w(ks[8], (D, D)),
        b_o=w(ks[9], (D,), 0.02),
        w1_t=w(ks[10], (D, DFF)),
        b1=w(ks[11], (DFF,), 0.02),
        w2_t=w(ks[12], (DFF, D)),
        b2=w(ks[13], (D,), 0.02),
    )

    # f32 weights: tight check against the pure-JAX reference.
    out = gpt_adaln_block(x, cond, params, num_heads=H)
    out = jax.block_until_ready(out)
    assert out.shape == (B, T, D)

    with jax.default_matmul_precision("highest"):
        ref = reference(x, cond, params, num_heads=H)
    ref = jax.block_until_ready(ref)
    max_err = float(jnp.max(jnp.abs(out - ref)))
    assert jnp.allclose(out, ref, atol=2e-3, rtol=2e-3), max_err

    # bf16-weight fast path (perf feedback): same kernel, weights cast in the
    # wrapper, f32 accumulation; checked loosely against the f32 reference.
    out_bf16 = gpt_adaln_block(x, cond, params, num_heads=H,
                               weight_dtype=jnp.bfloat16)
    out_bf16 = jax.block_until_ready(out_bf16).astype(jnp.float32)
    max_err_bf16 = float(jnp.max(jnp.abs(out_bf16 - ref)))
    assert jnp.allclose(out_bf16, ref, atol=5e-2, rtol=5e-2), max_err_bf16

    print("KERNEL_OK")
</pallas_src>

<mosaic_0001>
module attributes {stable_mosaic.version = 11 : i64} {
  func.func @fused_adaln_block_kernel(%arg0: i32, %arg1: memref<1x8x32xf32, #tpu.memory_space<vmem>>, %arg2: memref<1x8x32xf32, #tpu.memory_space<vmem>>, %arg3: memref<32x192xf32, #tpu.memory_space<vmem>>, %arg4: memref<1x192xf32, #tpu.memory_space<vmem>>, %arg5: memref<32x96xf32, #tpu.memory_space<vmem>>, %arg6: memref<1x96xf32, #tpu.memory_space<vmem>>, %arg7: memref<32x32xf32, #tpu.memory_space<vmem>>, %arg8: memref<1x32xf32, #tpu.memory_space<vmem>>, %arg9: memref<32x64xf32, #tpu.memory_space<vmem>>, %arg10: memref<1x64xf32, #tpu.memory_space<vmem>>, %arg11: memref<64x32xf32, #tpu.memory_space<vmem>>, %arg12: memref<1x32xf32, #tpu.memory_space<vmem>>, %arg13: memref<1x8x32xf32, #tpu.memory_space<vmem>>) attributes {dimension_semantics = [#tpu.dimension_semantics<parallel>], iteration_bounds = array<i64: 2>, scalar_prefetch = 0 : i64, scratch_operands = 0 : i64, tpu.core_type = #tpu.core_type<tc>, window_params = [{transform_indices = @transform_0, window_bounds = array<i64: 1, 8, 32>}, {transform_indices = @transform_1, window_bounds = array<i64: 1, 8, 32>}, {pipeline_mode = #tpu.pipeline_mode<synchronous>, transform_indices = @transform_2, window_bounds = array<i64: 32, 192>}, {pipeline_mode = #tpu.pipeline_mode<synchronous>, transform_indices = @transform_3, window_bounds = array<i64: 1, 192>}, {pipeline_mode = #tpu.pipeline_mode<synchronous>, transform_indices = @transform_4, window_bounds = array<i64: 32, 96>}, {pipeline_mode = #tpu.pipeline_mode<synchronous>, transform_indices = @transform_5, window_bounds = array<i64: 1, 96>}, {pipeline_mode = #tpu.pipeline_mode<synchronous>, transform_indices = @transform_6, window_bounds = array<i64: 32, 32>}, {pipeline_mode = #tpu.pipeline_mode<synchronous>, transform_indices = @transform_7, window_bounds = array<i64: 1, 32>}, {pipeline_mode = #tpu.pipeline_mode<synchronous>, transform_indices = @transform_8, window_bounds = array<i64: 32, 64>}, {pipeline_mode = #tpu.pipeline_mode<synchronous>, transform_indices = @transform_9, window_bounds = array<i64: 1, 64>}, {pipeline_mode = #tpu.pipeline_mode<synchronous>, transform_indices = @transform_10, window_bounds = array<i64: 64, 32>}, {pipeline_mode = #tpu.pipeline_mode<synchronous>, transform_indices = @transform_11, window_bounds = array<i64: 1, 32>}, {transform_indices = @transform_12, window_bounds = array<i64: 1, 8, 32>}]} {
    %c0 = arith.constant 0 : index
    %c0_0 = arith.constant 0 : index
    %c0_1 = arith.constant 0 : index
    %0 = vector.load %arg1[%c0, %c0_0, %c0_1] : memref<1x8x32xf32, #tpu.memory_space<vmem>>, vector<1x8x32xf32>
    %1 = vector.shape_cast %0 : vector<1x8x32xf32> to vector<8x32xf32>
    %c0_2 = arith.constant 0 : index
    %c0_3 = arith.constant 0 : index
    %c0_4 = arith.constant 0 : index
    %2 = vector.load %arg2[%c0_2, %c0_3, %c0_4] : memref<1x8x32xf32, #tpu.memory_space<vmem>>, vector<1x8x32xf32>
    %3 = vector.shape_cast %2 : vector<1x8x32xf32> to vector<8x32xf32>
    %4 = arith.negf %3 : vector<8x32xf32>
    %5 = math.exp %4 : vector<8x32xf32>
    %cst = arith.constant 1.000000e+00 : f32
    %6 = vector.broadcast %cst : f32 to vector<8x32xf32>
    %7 = arith.addf %6, %5 : vector<8x32xf32>
    %8 = arith.divf %6, %7 : vector<8x32xf32>
    %9 = arith.mulf %3, %8 : vector<8x32xf32>
    %c0_5 = arith.constant 0 : index
    %c0_6 = arith.constant 0 : index
    %10 = vector.load %arg3[%c0_5, %c0_6] : memref<32x192xf32, #tpu.memory_space<vmem>>, vector<32x192xf32>
    %cst_7 = arith.constant dense<0.000000e+00> : vector<8x192xf32>
    %11 = tpu.matmul %9, %10, %cst_7 {dimension_numbers = #tpu.dot_dimension_numbers<[1], [0], [0], [1], [0, 0, 1, 1], [], []>} : vector<8x32xf32>, vector<32x192xf32>, vector<8x192xf32> -> vector<8x192xf32>
    %c0_8 = arith.constant 0 : index
    %c0_9 = arith.constant 0 : index
    %12 = vector.load %arg4[%c0_8, %c0_9] : memref<1x192xf32, #tpu.memory_space<vmem>>, vector<1x192xf32>
    %13 = vector.broadcast %12 : vector<1x192xf32> to vector<8x192xf32>
    %14 = arith.addf %11, %13 : vector<8x192xf32>
    %15 = vector.extract_strided_slice %14 {offsets = [0, 0], sizes = [8, 32], strides = [1, 1]} : vector<8x192xf32> to vector<8x32xf32>
    %16 = vector.extract_strided_slice %14 {offsets = [0, 32], sizes = [8, 32], strides = [1, 1]} : vector<8x192xf32> to vector<8x32xf32>
    %17 = vector.extract_strided_slice %14 {offsets = [0, 64], sizes = [8, 32], strides = [1, 1]} : vector<8x192xf32> to vector<8x32xf32>
    %18 = vector.extract_strided_slice %14 {offsets = [0, 96], sizes = [8, 32], strides = [1, 1]} : vector<8x192xf32> to vector<8x32xf32>
    %19 = vector.extract_strided_slice %14 {offsets = [0, 128], sizes = [8, 32], strides = [1, 1]} : vector<8x192xf32> to vector<8x32xf32>
    %20 = vector.extract_strided_slice %14 {offsets = [0, 160], sizes = [8, 32], strides = [1, 1]} : vector<8x192xf32> to vector<8x32xf32>
    %cst_10 = arith.constant dense<0.000000e+00> : vector<8xf32>
    %21 = vector.multi_reduction <add>, %1, %cst_10 [1] : vector<8x32xf32> to vector<8xf32>
    %22 = vector.shape_cast %21 : vector<8xf32> to vector<8x1xf32>
    %cst_11 = arith.constant 3.200000e+01 : f32
    %23 = vector.broadcast %cst_11 : f32 to vector<8x1xf32>
    %24 = arith.divf %22, %23 : vector<8x1xf32>
    %25 = vector.broadcast %24 : vector<8x1xf32> to vector<8x32xf32>
    %26 = arith.subf %1, %25 : vector<8x32xf32>
    %27 = arith.mulf %26, %26 : vector<8x32xf32>
    %cst_12 = arith.constant dense<0.000000e+00> : vector<8xf32>
    %28 = vector.multi_reduction <add>, %27, %cst_12 [1] : vector<8x32xf32> to vector<8xf32>
    %29 = vector.shape_cast %28 : vector<8xf32> to vector<8x1xf32>
    %cst_13 = arith.constant 3.200000e+01 : f32
    %30 = vector.broadcast %cst_13 : f32 to vector<8x1xf32>
    %31 = arith.divf %29, %30 : vector<8x1xf32>
    %cst_14 = arith.constant 9.99999997E-7 : f32
    %32 = vector.broadcast %cst_14 : f32 to vector<8x1xf32>
    %33 = arith.addf %31, %32 : vector<8x1xf32>
    %34 = math.rsqrt %33 : vector<8x1xf32>
    %35 = vector.broadcast %34 : vector<8x1xf32> to vector<8x32xf32>
    %36 = arith.mulf %26, %35 : vector<8x32xf32>
    %cst_15 = arith.constant 1.000000e+00 : f32
    %37 = vector.broadcast %cst_15 : f32 to vector<8x32xf32>
    %38 = arith.addf %37, %16 : vector<8x32xf32>
    %39 = arith.mulf %36, %38 : vector<8x32xf32>
    %40 = arith.addf %39, %15 : vector<8x32xf32>
    %c0_16 = arith.constant 0 : index
    %c0_17 = arith.constant 0 : index
    %41 = vector.load %arg5[%c0_16, %c0_17] : memref<32x96xf32, #tpu.memory_space<vmem>>, vector<32x96xf32>
    %cst_18 = arith.constant dense<0.000000e+00> : vector<8x96xf32>
    %42 = tpu.matmul %40, %41, %cst_18 {dimension_numbers = #tpu.dot_dimension_numbers<[1], [0], [0], [1], [0, 0, 1, 1], [], []>} : vector<8x32xf32>, vector<32x96xf32>, vector<8x96xf32> -> vector<8x96xf32>
    %c0_19 = arith.constant 0 : index
    %c0_20 = arith.constant 0 : index
    %43 = vector.load %arg6[%c0_19, %c0_20] : memref<1x96xf32, #tpu.memory_space<vmem>>, vector<1x96xf32>
    %44 = vector.broadcast %43 : vector<1x96xf32> to vector<8x96xf32>
    %45 = arith.addf %42, %44 : vector<8x96xf32>
    %46 = vector.extract_strided_slice %45 {offsets = [0, 0], sizes = [8, 32], strides = [1, 1]} : vector<8x96xf32> to vector<8x32xf32>
    %47 = vector.shape_cast %46 : vector<8x32xf32> to vector<1x8x32xf32>
    %48 = vector.extract_strided_slice %45 {offsets = [0, 32], sizes = [8, 32], strides = [1, 1]} : vector<8x96xf32> to vector<8x32xf32>
    %49 = vector.shape_cast %48 : vector<8x32xf32> to vector<1x8x32xf32>
    %50 = vector.extract_strided_slice %45 {offsets = [0, 64], sizes = [8, 32], strides = [1, 1]} : vector<8x96xf32> to vector<8x32xf32>
    %51 = vector.shape_cast %50 : vector<8x32xf32> to vector<1x8x32xf32>
    %52 = vector.extract_strided_slice %47 {offsets = [0, 0, 0], sizes = [1, 8, 8], strides = [1, 1, 1]} : vector<1x8x32xf32> to vector<1x8x8xf32>
    %53 = vector.extract_strided_slice %49 {offsets = [0, 0, 0], sizes = [1, 8, 8], strides = [1, 1, 1]} : vector<1x8x32xf32> to vector<1x8x8xf32>
    %54 = vector.extract_strided_slice %51 {offsets = [0, 0, 0], sizes = [1, 8, 8], strides = [1, 1, 1]} : vector<1x8x32xf32> to vector<1x8x8xf32>
    "tpu.trace_start"() <{level = 10 : i32, message = "bqd,bkd->bqk"}> : () -> ()
    %cst_21 = arith.constant dense<0.000000e+00> : vector<1x8x8xf32>
    %55 = tpu.matmul %52, %53, %cst_21 {dimension_numbers = #tpu.dot_dimension_numbers<[2], [2], [1], [1], [0, 0, 0, 1, 1, 1], [0], [0]>} : vector<1x8x8xf32>, vector<1x8x8xf32>, vector<1x8x8xf32> -> vector<1x8x8xf32>
    "tpu.trace_stop"() : () -> ()
    %cst_22 = arith.constant 0.353553385 : f32
    %56 = vector.broadcast %cst_22 : f32 to vector<1x8x8xf32>
    %57 = arith.mulf %55, %56 : vector<1x8x8xf32>
    %cst_23 = arith.constant dense<0xFF800000> : vector<1x8xf32>
    %58 = vector.multi_reduction <maximumf>, %57, %cst_23 [2] : vector<1x8x8xf32> to vector<1x8xf32>
    %59 = vector.shape_cast %58 : vector<1x8xf32> to vector<1x8x1xf32>
    %60 = vector.broadcast %59 : vector<1x8x1xf32> to vector<1x8x8xf32>
    %61 = arith.subf %57, %60 : vector<1x8x8xf32>
    %62 = math.exp %61 : vector<1x8x8xf32>
    %cst_24 = arith.constant dense<0.000000e+00> : vector<1x8xf32>
    %63 = vector.multi_reduction <add>, %62, %cst_24 [2] : vector<1x8x8xf32> to vector<1x8xf32>
    %64 = vector.shape_cast %63 : vector<1x8xf32> to vector<1x8x1xf32>
    %65 = vector.broadcast %64 : vector<1x8x1xf32> to vector<1x8x8xf32>
    %66 = arith.divf %62, %65 : vector<1x8x8xf32>
    "tpu.trace_start"() <{level = 10 : i32, message = "bqk,bkd->bqd"}> : () -> ()
    %cst_25 = arith.constant dense<0.000000e+00> : vector<1x8x8xf32>
    %67 = tpu.matmul %66, %54, %cst_25 {dimension_numbers = #tpu.dot_dimension_numbers<[2], [1], [1], [2], [0, 0, 0, 1, 1, 2], [0], [0]>} : vector<1x8x8xf32>, vector<1x8x8xf32>, vector<1x8x8xf32> -> vector<1x8x8xf32>
    "tpu.trace_stop"() : () -> ()
    %68 = vector.extract_strided_slice %47 {offsets = [0, 0, 8], sizes = [1, 8, 8], strides = [1, 1, 1]} : vector<1x8x32xf32> to vector<1x8x8xf32>
    %69 = vector.extract_strided_slice %49 {offsets = [0, 0, 8], sizes = [1, 8, 8], strides = [1, 1, 1]} : vector<1x8x32xf32> to vector<1x8x8xf32>
    %70 = vector.extract_strided_slice %51 {offsets = [0, 0, 8], sizes = [1, 8, 8], strides = [1, 1, 1]} : vector<1x8x32xf32> to vector<1x8x8xf32>
    "tpu.trace_start"() <{level = 10 : i32, message = "bqd,bkd->bqk"}> : () -> ()
    %cst_26 = arith.constant dense<0.000000e+00> : vector<1x8x8xf32>
    %71 = tpu.matmul %68, %69, %cst_26 {dimension_numbers = #tpu.dot_dimension_numbers<[2], [2], [1], [1], [0, 0, 0, 1, 1, 1], [0], [0]>} : vector<1x8x8xf32>, vector<1x8x8xf32>, vector<1x8x8xf32> -> vector<1x8x8xf32>
    "tpu.trace_stop"() : () -> ()
    %cst_27 = arith.constant 0.353553385 : f32
    %72 = vector.broadcast %cst_27 : f32 to vector<1x8x8xf32>
    %73 = arith.mulf %71, %72 : vector<1x8x8xf32>
    %cst_28 = arith.constant dense<0xFF800000> : vector<1x8xf32>
    %74 = vector.multi_reduction <maximumf>, %73, %cst_28 [2] : vector<1x8x8xf32> to vector<1x8xf32>
    %75 = vector.shape_cast %74 : vector<1x8xf32> to vector<1x8x1xf32>
    %76 = vector.broadcast %75 : vector<1x8x1xf32> to vector<1x8x8xf32>
    %77 = arith.subf %73, %76 : vector<1x8x8xf32>
    %78 = math.exp %77 : vector<1x8x8xf32>
    %cst_29 = arith.constant dense<0.000000e+00> : vector<1x8xf32>
    %79 = vector.multi_reduction <add>, %78, %cst_29 [2] : vector<1x8x8xf32> to vector<1x8xf32>
    %80 = vector.shape_cast %79 : vector<1x8xf32> to vector<1x8x1xf32>
    %81 = vector.broadcast %80 : vector<1x8x1xf32> to vector<1x8x8xf32>
    %82 = arith.divf %78, %81 : vector<1x8x8xf32>
    "tpu.trace_start"() <{level = 10 : i32, message = "bqk,bkd->bqd"}> : () -> ()
    %cst_30 = arith.constant dense<0.000000e+00> : vector<1x8x8xf32>
    %83 = tpu.matmul %82, %70, %cst_30 {dimension_numbers = #tpu.dot_dimension_numbers<[2], [1], [1], [2], [0, 0, 0, 1, 1, 2], [0], [0]>} : vector<1x8x8xf32>, vector<1x8x8xf32>, vector<1x8x8xf32> -> vector<1x8x8xf32>
    "tpu.trace_stop"() : () -> ()
    %84 = vector.extract_strided_slice %47 {offsets = [0, 0, 16], sizes = [1, 8, 8], strides = [1, 1, 1]} : vector<1x8x32xf32> to vector<1x8x8xf32>
    %85 = vector.extract_strided_slice %49 {offsets = [0, 0, 16], sizes = [1, 8, 8], strides = [1, 1, 1]} : vector<1x8x32xf32> to vector<1x8x8xf32>
    %86 = vector.extract_strided_slice %51 {offsets = [0, 0, 16], sizes = [1, 8, 8], strides = [1, 1, 1]} : vector<1x8x32xf32> to vector<1x8x8xf32>
    "tpu.trace_start"() <{level = 10 : i32, message = "bqd,bkd->bqk"}> : () -> ()
    %cst_31 = arith.constant dense<0.000000e+00> : vector<1x8x8xf32>
    %87 = tpu.matmul %84, %85, %cst_31 {dimension_numbers = #tpu.dot_dimension_numbers<[2], [2], [1], [1], [0, 0, 0, 1, 1, 1], [0], [0]>} : vector<1x8x8xf32>, vector<1x8x8xf32>, vector<1x8x8xf32> -> vector<1x8x8xf32>
    "tpu.trace_stop"() : () -> ()
    %cst_32 = arith.constant 0.353553385 : f32
    %88 = vector.broadcast %cst_32 : f32 to vector<1x8x8xf32>
    %89 = arith.mulf %87, %88 : vector<1x8x8xf32>
    %cst_33 = arith.constant dense<0xFF800000> : vector<1x8xf32>
    %90 = vector.multi_reduction <maximumf>, %89, %cst_33 [2] : vector<1x8x8xf32> to vector<1x8xf32>
    %91 = vector.shape_cast %90 : vector<1x8xf32> to vector<1x8x1xf32>
    %92 = vector.broadcast %91 : vector<1x8x1xf32> to vector<1x8x8xf32>
    %93 = arith.subf %89, %92 : vector<1x8x8xf32>
    %94 = math.exp %93 : vector<1x8x8xf32>
    %cst_34 = arith.constant dense<0.000000e+00> : vector<1x8xf32>
    %95 = vector.multi_reduction <add>, %94, %cst_34 [2] : vector<1x8x8xf32> to vector<1x8xf32>
    %96 = vector.shape_cast %95 : vector<1x8xf32> to vector<1x8x1xf32>
    %97 = vector.broadcast %96 : vector<1x8x1xf32> to vector<1x8x8xf32>
    %98 = arith.divf %94, %97 : vector<1x8x8xf32>
    "tpu.trace_start"() <{level = 10 : i32, message = "bqk,bkd->bqd"}> : () -> ()
    %cst_35 = arith.constant dense<0.000000e+00> : vector<1x8x8xf32>
    %99 = tpu.matmul %98, %86, %cst_35 {dimension_numbers = #tpu.dot_dimension_numbers<[2], [1], [1], [2], [0, 0, 0, 1, 1, 2], [0], [0]>} : vector<1x8x8xf32>, vector<1x8x8xf32>, vector<1x8x8xf32> -> vector<1x8x8xf32>
    "tpu.trace_stop"() : () -> ()
    %100 = vector.extract_strided_slice %47 {offsets = [0, 0, 24], sizes = [1, 8, 8], strides = [1, 1, 1]} : vector<1x8x32xf32> to vector<1x8x8xf32>
    %101 = vector.extract_strided_slice %49 {offsets = [0, 0, 24], sizes = [1, 8, 8], strides = [1, 1, 1]} : vector<1x8x32xf32> to vector<1x8x8xf32>
    %102 = vector.extract_strided_slice %51 {offsets = [0, 0, 24], sizes = [1, 8, 8], strides = [1, 1, 1]} : vector<1x8x32xf32> to vector<1x8x8xf32>
    "tpu.trace_start"() <{level = 10 : i32, message = "bqd,bkd->bqk"}> : () -> ()
    %cst_36 = arith.constant dense<0.000000e+00> : vector<1x8x8xf32>
    %103 = tpu.matmul %100, %101, %cst_36 {dimension_numbers = #tpu.dot_dimension_numbers<[2], [2], [1], [1], [0, 0, 0, 1, 1, 1], [0], [0]>} : vector<1x8x8xf32>, vector<1x8x8xf32>, vector<1x8x8xf32> -> vector<1x8x8xf32>
    "tpu.trace_stop"() : () -> ()
    %cst_37 = arith.constant 0.353553385 : f32
    %104 = vector.broadcast %cst_37 : f32 to vector<1x8x8xf32>
    %105 = arith.mulf %103, %104 : vector<1x8x8xf32>
    %cst_38 = arith.constant dense<0xFF800000> : vector<1x8xf32>
    %106 = vector.multi_reduction <maximumf>, %105, %cst_38 [2] : vector<1x8x8xf32> to vector<1x8xf32>
    %107 = vector.shape_cast %106 : vector<1x8xf32> to vector<1x8x1xf32>
    %108 = vector.broadcast %107 : vector<1x8x1xf32> to vector<1x8x8xf32>
    %109 = arith.subf %105, %108 : vector<1x8x8xf32>
    %110 = math.exp %109 : vector<1x8x8xf32>
    %cst_39 = arith.constant dense<0.000000e+00> : vector<1x8xf32>
    %111 = vector.multi_reduction <add>, %110, %cst_39 [2] : vector<1x8x8xf32> to vector<1x8xf32>
    %112 = vector.shape_cast %111 : vector<1x8xf32> to vector<1x8x1xf32>
    %113 = vector.broadcast %112 : vector<1x8x1xf32> to vector<1x8x8xf32>
    %114 = arith.divf %110, %113 : vector<1x8x8xf32>
    "tpu.trace_start"() <{level = 10 : i32, message = "bqk,bkd->bqd"}> : () -> ()
    %cst_40 = arith.constant dense<0.000000e+00> : vector<1x8x8xf32>
    %115 = tpu.matmul %114, %102, %cst_40 {dimension_numbers = #tpu.dot_dimension_numbers<[2], [1], [1], [2], [0, 0, 0, 1, 1, 2], [0], [0]>} : vector<1x8x8xf32>, vector<1x8x8xf32>, vector<1x8x8xf32> -> vector<1x8x8xf32>
    "tpu.trace_stop"() : () -> ()
    %116 = tpu.concatenate %67, %83, %99, %115 in 2 : vector<1x8x8xf32>, vector<1x8x8xf32>, vector<1x8x8xf32>, vector<1x8x8xf32> -> vector<1x8x32xf32>
    %117 = vector.shape_cast %116 : vector<1x8x32xf32> to vector<8x32xf32>
    %c0_41 = arith.constant 0 : index
    %c0_42 = arith.constant 0 : index
    %118 = vector.load %arg7[%c0_41, %c0_42] : memref<32x32xf32, #tpu.memory_space<vmem>>, vector<32x32xf32>
    %cst_43 = arith.constant dense<0.000000e+00> : vector<8x32xf32>
    %119 = tpu.matmul %117, %118, %cst_43 {dimension_numbers = #tpu.dot_dimension_numbers<[1], [0], [0], [1], [0, 0, 1, 1], [], []>} : vector<8x32xf32>, vector<32x32xf32>, vector<8x32xf32> -> vector<8x32xf32>
    %c0_44 = arith.constant 0 : index
    %c0_45 = arith.constant 0 : index
    %120 = vector.load %arg8[%c0_44, %c0_45] : memref<1x32xf32, #tpu.memory_space<vmem>>, vector<1x32xf32>
    %121 = vector.broadcast %120 : vector<1x32xf32> to vector<8x32xf32>
    %122 = arith.addf %119, %121 : vector<8x32xf32>
    %123 = arith.mulf %17, %122 : vector<8x32xf32>
    %124 = arith.addf %1, %123 : vector<8x32xf32>
    %cst_46 = arith.constant dense<0.000000e+00> : vector<8xf32>
    %125 = vector.multi_reduction <add>, %124, %cst_46 [1] : vector<8x32xf32> to vector<8xf32>
    %126 = vector.shape_cast %125 : vector<8xf32> to vector<8x1xf32>
    %cst_47 = arith.constant 3.200000e+01 : f32
    %127 = vector.broadcast %cst_47 : f32 to vector<8x1xf32>
    %128 = arith.divf %126, %127 : vector<8x1xf32>
    %129 = vector.broadcast %128 : vector<8x1xf32> to vector<8x32xf32>
    %130 = arith.subf %124, %129 : vector<8x32xf32>
    %131 = arith.mulf %130, %130 : vector<8x32xf32>
    %cst_48 = arith.constant dense<0.000000e+00> : vector<8xf32>
    %132 = vector.multi_reduction <add>, %131, %cst_48 [1] : vector<8x32xf32> to vector<8xf32>
    %133 = vector.shape_cast %132 : vector<8xf32> to vector<8x1xf32>
    %cst_49 = arith.constant 3.200000e+01 : f32
    %134 = vector.broadcast %cst_49 : f32 to vector<8x1xf32>
    %135 = arith.divf %133, %134 : vector<8x1xf32>
    %cst_50 = arith.constant 9.99999997E-7 : f32
    %136 = vector.broadcast %cst_50 : f32 to vector<8x1xf32>
    %137 = arith.addf %135, %136 : vector<8x1xf32>
    %138 = math.rsqrt %137 : vector<8x1xf32>
    %139 = vector.broadcast %138 : vector<8x1xf32> to vector<8x32xf32>
    %140 = arith.mulf %130, %139 : vector<8x32xf32>
    %cst_51 = arith.constant 1.000000e+00 : f32
    %141 = vector.broadcast %cst_51 : f32 to vector<8x32xf32>
    %142 = arith.addf %141, %19 : vector<8x32xf32>
    %143 = arith.mulf %140, %142 : vector<8x32xf32>
    %144 = arith.addf %143, %18 : vector<8x32xf32>
    %c0_52 = arith.constant 0 : index
    %c0_53 = arith.constant 0 : index
    %145 = vector.load %arg9[%c0_52, %c0_53] : memref<32x64xf32, #tpu.memory_space<vmem>>, vector<32x64xf32>
    %cst_54 = arith.constant dense<0.000000e+00> : vector<8x64xf32>
    %146 = tpu.matmul %144, %145, %cst_54 {dimension_numbers = #tpu.dot_dimension_numbers<[1], [0], [0], [1], [0, 0, 1, 1], [], []>} : vector<8x32xf32>, vector<32x64xf32>, vector<8x64xf32> -> vector<8x64xf32>
    %c0_55 = arith.constant 0 : index
    %c0_56 = arith.constant 0 : index
    %147 = vector.load %arg10[%c0_55, %c0_56] : memref<1x64xf32, #tpu.memory_space<vmem>>, vector<1x64xf32>
    %148 = vector.broadcast %147 : vector<1x64xf32> to vector<8x64xf32>
    %149 = arith.addf %146, %148 : vector<8x64xf32>
    %150 = arith.mulf %149, %149 : vector<8x64xf32>
    %151 = arith.mulf %149, %150 : vector<8x64xf32>
    %cst_57 = arith.constant 4.471500e-02 : f32
    %152 = vector.broadcast %cst_57 : f32 to vector<8x64xf32>
    %153 = arith.mulf %152, %151 : vector<8x64xf32>
    %154 = arith.addf %149, %153 : vector<8x64xf32>
    %cst_58 = arith.constant 0.797884583 : f32
    %155 = vector.broadcast %cst_58 : f32 to vector<8x64xf32>
    %156 = arith.mulf %155, %154 : vector<8x64xf32>
    %157 = math.tanh %156 : vector<8x64xf32>
    %cst_59 = arith.constant 1.000000e+00 : f32
    %158 = vector.broadcast %cst_59 : f32 to vector<8x64xf32>
    %159 = arith.addf %158, %157 : vector<8x64xf32>
    %cst_60 = arith.constant 5.000000e-01 : f32
    %160 = vector.broadcast %cst_60 : f32 to vector<8x64xf32>
    %161 = arith.mulf %160, %159 : vector<8x64xf32>
    %162 = arith.mulf %149, %161 : vector<8x64xf32>
    %c0_61 = arith.constant 0 : index
    %c0_62 = arith.constant 0 : index
    %163 = vector.load %arg11[%c0_61, %c0_62] : memref<64x32xf32, #tpu.memory_space<vmem>>, vector<64x32xf32>
    %cst_63 = arith.constant dense<0.000000e+00> : vector<8x32xf32>
    %164 = tpu.matmul %162, %163, %cst_63 {dimension_numbers = #tpu.dot_dimension_numbers<[1], [0], [0], [1], [0, 0, 1, 1], [], []>} : vector<8x64xf32>, vector<64x32xf32>, vector<8x32xf32> -> vector<8x32xf32>
    %c0_64 = arith.constant 0 : index
    %c0_65 = arith.constant 0 : index
    %165 = vector.load %arg12[%c0_64, %c0_65] : memref<1x32xf32, #tpu.memory_space<vmem>>, vector<1x32xf32>
    %166 = vector.broadcast %165 : vector<1x32xf32> to vector<8x32xf32>
    %167 = arith.addf %164, %166 : vector<8x32xf32>
    %168 = arith.mulf %20, %167 : vector<8x32xf32>
    %169 = arith.addf %124, %168 : vector<8x32xf32>
    %170 = vector.shape_cast %169 : vector<8x32xf32> to vector<1x8x32xf32>
    %c0_66 = arith.constant 0 : index
    %c0_67 = arith.constant 0 : index
    %c0_68 = arith.constant 0 : index
    %171 = vector.load %arg13[%c0_66, %c0_67, %c0_68] : memref<1x8x32xf32, #tpu.memory_space<vmem>>, vector<1x8x32xf32>
    tpu.vector_store %arg13[%c0_66, %c0_67, %c0_68], %170 {strides = array<i32>} : memref<1x8x32xf32, #tpu.memory_space<vmem>>, vector<1x8x32xf32>,
    return
  }
  func.func @transform_0(%arg0: i32) -> (i32, i32, i32) {
    %c0_i32 = arith.constant 0 : i32
    %c0_i32_0 = arith.constant 0 : i32
    %c0_i32_1 = arith.constant 0 : i32
    return %arg0, %c0_i32, %c0_i32_0 : i32, i32, i32
  }
  func.func @transform_1(%arg0: i32) -> (i32, i32, i32) {
    %c0_i32 = arith.constant 0 : i32
    %c0_i32_0 = arith.constant 0 : i32
    %c0_i32_1 = arith.constant 0 : i32
    return %arg0, %c0_i32, %c0_i32_0 : i32, i32, i32
  }
  func.func @transform_2(%arg0: i32) -> (i32, i32) {
    %c0_i32 = arith.constant 0 : i32
    %c0_i32_0 = arith.constant 0 : i32
    %c0_i32_1 = arith.constant 0 : i32
    return %c0_i32, %c0_i32_0 : i32, i32
  }
  func.func @transform_3(%arg0: i32) -> (i32, i32) {
    %c0_i32 = arith.constant 0 : i32
    %c0_i32_0 = arith.constant 0 : i32
    %c0_i32_1 = arith.constant 0 : i32
    return %c0_i32, %c0_i32_0 : i32, i32
  }
  func.func @transform_4(%arg0: i32) -> (i32, i32) {
    %c0_i32 = arith.constant 0 : i32
    %c0_i32_0 = arith.constant 0 : i32
    %c0_i32_1 = arith.constant 0 : i32
    return %c0_i32, %c0_i32_0 : i32, i32
  }
  func.func @transform_5(%arg0: i32) -> (i32, i32) {
    %c0_i32 = arith.constant 0 : i32
    %c0_i32_0 = arith.constant 0 : i32
    %c0_i32_1 = arith.constant 0 : i32
    return %c0_i32, %c0_i32_0 : i32, i32
  }
  func.func @transform_6(%arg0: i32) -> (i32, i32) {
    %c0_i32 = arith.constant 0 : i32
    %c0_i32_0 = arith.constant 0 : i32
    %c0_i32_1 = arith.constant 0 : i32
    return %c0_i32, %c0_i32_0 : i32, i32
  }
  func.func @transform_7(%arg0: i32) -> (i32, i32) {
    %c0_i32 = arith.constant 0 : i32
    %c0_i32_0 = arith.constant 0 : i32
    %c0_i32_1 = arith.constant 0 : i32
    return %c0_i32, %c0_i32_0 : i32, i32
  }
  func.func @transform_8(%arg0: i32) -> (i32, i32) {
    %c0_i32 = arith.constant 0 : i32
    %c0_i32_0 = arith.constant 0 : i32
    %c0_i32_1 = arith.constant 0 : i32
    return %c0_i32, %c0_i32_0 : i32, i32
  }
  func.func @transform_9(%arg0: i32) -> (i32, i32) {
    %c0_i32 = arith.constant 0 : i32
    %c0_i32_0 = arith.constant 0 : i32
    %c0_i32_1 = arith.constant 0 : i32
    return %c0_i32, %c0_i32_0 : i32, i32
  }
  func.func @transform_10(%arg0: i32) -> (i32, i32) {
    %c0_i32 = arith.constant 0 : i32
    %c0_i32_0 = arith.constant 0 : i32
    %c0_i32_1 = arith.constant 0 : i32
    return %c0_i32, %c0_i32_0 : i32, i32
  }
  func.func @transform_11(%arg0: i32) -> (i32, i32) {
    %c0_i32 = arith.constant 0 : i32
    %c0_i32_0 = arith.constant 0 : i32
    %c0_i32_1 = arith.constant 0 : i32
    return %c0_i32, %c0_i32_0 : i32, i32
  }
  func.func @transform_12(%arg0: i32) -> (i32, i32, i32) {
    %c0_i32 = arith.constant 0 : i32
    %c0_i32_0 = arith.constant 0 : i32
    %c0_i32_1 = arith.constant 0 : i32
    return %arg0, %c0_i32, %c0_i32_0 : i32, i32, i32
  }
}

module attributes {stable_mosaic.version = 11 : i64} {
  func.func @fused_adaln_block_kernel(%arg0: i32, %arg1: memref<1x8x32xf32, #tpu.memory_space<vmem>>, %arg2: memref<1x8x32xf32, #tpu.memory_space<vmem>>, %arg3: memref<32x192xf32, #tpu.memory_space<vmem>>, %arg4: memref<1x192xf32, #tpu.memory_space<vmem>>, %arg5: memref<32x96xf32, #tpu.memory_space<vmem>>, %arg6: memref<1x96xf32, #tpu.memory_space<vmem>>, %arg7: memref<32x32xf32, #tpu.memory_space<vmem>>, %arg8: memref<1x32xf32, #tpu.memory_space<vmem>>, %arg9: memref<32x64xf32, #tpu.memory_space<vmem>>, %arg10: memref<1x64xf32, #tpu.memory_space<vmem>>, %arg11: memref<64x32xf32, #tpu.memory_space<vmem>>, %arg12: memref<1x32xf32, #tpu.memory_space<vmem>>, %arg13: memref<1x8x32xf32, #tpu.memory_space<vmem>>) attributes {dimension_semantics = [#tpu.dimension_semantics<parallel>], iteration_bounds = array<i64: 2>, scalar_prefetch = 0 : i64, scratch_operands = 0 : i64, tpu.core_type = #tpu.core_type<tc>, window_params = [{transform_indices = @transform_0, window_bounds = array<i64: 1, 8, 32>}, {transform_indices = @transform_1, window_bounds = array<i64: 1, 8, 32>}, {pipeline_mode = #tpu.pipeline_mode<synchronous>, transform_indices = @transform_2, window_bounds = array<i64: 32, 192>}, {pipeline_mode = #tpu.pipeline_mode<synchronous>, transform_indices = @transform_3, window_bounds = array<i64: 1, 192>}, {pipeline_mode = #tpu.pipeline_mode<synchronous>, transform_indices = @transform_4, window_bounds = array<i64: 32, 96>}, {pipeline_mode = #tpu.pipeline_mode<synchronous>, transform_indices = @transform_5, window_bounds = array<i64: 1, 96>}, {pipeline_mode = #tpu.pipeline_mode<synchronous>, transform_indices = @transform_6, window_bounds = array<i64: 32, 32>}, {pipeline_mode = #tpu.pipeline_mode<synchronous>, transform_indices = @transform_7, window_bounds = array<i64: 1, 32>}, {pipeline_mode = #tpu.pipeline_mode<synchronous>, transform_indices = @transform_8, window_bounds = array<i64: 32, 64>}, {pipeline_mode = #tpu.pipeline_mode<synchronous>, transform_indices = @transform_9, window_bounds = array<i64: 1, 64>}, {pipeline_mode = #tpu.pipeline_mode<synchronous>, transform_indices = @transform_10, window_bounds = array<i64: 64, 32>}, {pipeline_mode = #tpu.pipeline_mode<synchronous>, transform_indices = @transform_11, window_bounds = array<i64: 1, 32>}, {transform_indices = @transform_12, window_bounds = array<i64: 1, 8, 32>}]} {
    %c0 = arith.constant 0 : index
    %c0_0 = arith.constant 0 : index
    %c0_1 = arith.constant 0 : index
    %0 = vector.load %arg1[%c0, %c0_0, %c0_1] : memref<1x8x32xf32, #tpu.memory_space<vmem>>, vector<1x8x32xf32>
    %1 = vector.shape_cast %0 : vector<1x8x32xf32> to vector<8x32xf32>
    %c0_2 = arith.constant 0 : index
    %c0_3 = arith.constant 0 : index
    %c0_4 = arith.constant 0 : index
    %2 = vector.load %arg2[%c0_2, %c0_3, %c0_4] : memref<1x8x32xf32, #tpu.memory_space<vmem>>, vector<1x8x32xf32>
    %3 = vector.shape_cast %2 : vector<1x8x32xf32> to vector<8x32xf32>
    %4 = arith.negf %3 : vector<8x32xf32>
    %5 = math.exp %4 : vector<8x32xf32>
    %cst = arith.constant 1.000000e+00 : f32
    %6 = vector.broadcast %cst : f32 to vector<8x32xf32>
    %7 = arith.addf %6, %5 : vector<8x32xf32>
    %8 = arith.divf %6, %7 : vector<8x32xf32>
    %9 = arith.mulf %3, %8 : vector<8x32xf32>
    %c0_5 = arith.constant 0 : index
    %c0_6 = arith.constant 0 : index
    %10 = vector.load %arg3[%c0_5, %c0_6] : memref<32x192xf32, #tpu.memory_space<vmem>>, vector<32x192xf32>
    %cst_7 = arith.constant dense<0.000000e+00> : vector<8x192xf32>
    %11 = tpu.matmul %9, %10, %cst_7 {dimension_numbers = #tpu.dot_dimension_numbers<[1], [0], [0], [1], [0, 0, 1, 1], [], []>} : vector<8x32xf32>, vector<32x192xf32>, vector<8x192xf32> -> vector<8x192xf32>
    %c0_8 = arith.constant 0 : index
    %c0_9 = arith.constant 0 : index
    %12 = vector.load %arg4[%c0_8, %c0_9] : memref<1x192xf32, #tpu.memory_space<vmem>>, vector<1x192xf32>
    %13 = vector.broadcast %12 : vector<1x192xf32> to vector<8x192xf32>
    %14 = arith.addf %11, %13 : vector<8x192xf32>
    %15 = vector.extract_strided_slice %14 {offsets = [0, 0], sizes = [8, 32], strides = [1, 1]} : vector<8x192xf32> to vector<8x32xf32>
    %16 = vector.extract_strided_slice %14 {offsets = [0, 32], sizes = [8, 32], strides = [1, 1]} : vector<8x192xf32> to vector<8x32xf32>
    %17 = vector.extract_strided_slice %14 {offsets = [0, 64], sizes = [8, 32], strides = [1, 1]} : vector<8x192xf32> to vector<8x32xf32>
    %18 = vector.extract_strided_slice %14 {offsets = [0, 96], sizes = [8, 32], strides = [1, 1]} : vector<8x192xf32> to vector<8x32xf32>
    %19 = vector.extract_strided_slice %14 {offsets = [0, 128], sizes = [8, 32], strides = [1, 1]} : vector<8x192xf32> to vector<8x32xf32>
    %20 = vector.extract_strided_slice %14 {offsets = [0, 160], sizes = [8, 32], strides = [1, 1]} : vector<8x192xf32> to vector<8x32xf32>
    %cst_10 = arith.constant dense<0.000000e+00> : vector<8xf32>
    %21 = vector.multi_reduction <add>, %1, %cst_10 [1] : vector<8x32xf32> to vector<8xf32>
    %22 = vector.shape_cast %21 : vector<8xf32> to vector<8x1xf32>
    %cst_11 = arith.constant 3.200000e+01 : f32
    %23 = vector.broadcast %cst_11 : f32 to vector<8x1xf32>
    %24 = arith.divf %22, %23 : vector<8x1xf32>
    %25 = vector.broadcast %24 : vector<8x1xf32> to vector<8x32xf32>
    %26 = arith.subf %1, %25 : vector<8x32xf32>
    %27 = arith.mulf %26, %26 : vector<8x32xf32>
    %cst_12 = arith.constant dense<0.000000e+00> : vector<8xf32>
    %28 = vector.multi_reduction <add>, %27, %cst_12 [1] : vector<8x32xf32> to vector<8xf32>
    %29 = vector.shape_cast %28 : vector<8xf32> to vector<8x1xf32>
    %cst_13 = arith.constant 3.200000e+01 : f32
    %30 = vector.broadcast %cst_13 : f32 to vector<8x1xf32>
    %31 = arith.divf %29, %30 : vector<8x1xf32>
    %cst_14 = arith.constant 9.99999997E-7 : f32
    %32 = vector.broadcast %cst_14 : f32 to vector<8x1xf32>
    %33 = arith.addf %31, %32 : vector<8x1xf32>
    %34 = math.rsqrt %33 : vector<8x1xf32>
    %35 = vector.broadcast %34 : vector<8x1xf32> to vector<8x32xf32>
    %36 = arith.mulf %26, %35 : vector<8x32xf32>
    %cst_15 = arith.constant 1.000000e+00 : f32
    %37 = vector.broadcast %cst_15 : f32 to vector<8x32xf32>
    %38 = arith.addf %37, %16 : vector<8x32xf32>
    %39 = arith.mulf %36, %38 : vector<8x32xf32>
    %40 = arith.addf %39, %15 : vector<8x32xf32>
    %c0_16 = arith.constant 0 : index
    %c0_17 = arith.constant 0 : index
    %41 = vector.load %arg5[%c0_16, %c0_17] : memref<32x96xf32, #tpu.memory_space<vmem>>, vector<32x96xf32>
    %cst_18 = arith.constant dense<0.000000e+00> : vector<8x96xf32>
    %42 = tpu.matmul %40, %41, %cst_18 {dimension_numbers = #tpu.dot_dimension_numbers<[1], [0], [0], [1], [0, 0, 1, 1], [], []>} : vector<8x32xf32>, vector<32x96xf32>, vector<8x96xf32> -> vector<8x96xf32>
    %c0_19 = arith.constant 0 : index
    %c0_20 = arith.constant 0 : index
    %43 = vector.load %arg6[%c0_19, %c0_20] : memref<1x96xf32, #tpu.memory_space<vmem>>, vector<1x96xf32>
    %44 = vector.broadcast %43 : vector<1x96xf32> to vector<8x96xf32>
    %45 = arith.addf %42, %44 : vector<8x96xf32>
    %46 = vector.extract_strided_slice %45 {offsets = [0, 0], sizes = [8, 32], strides = [1, 1]} : vector<8x96xf32> to vector<8x32xf32>
    %47 = vector.shape_cast %46 : vector<8x32xf32> to vector<1x8x32xf32>
    %48 = vector.extract_strided_slice %45 {offsets = [0, 32], sizes = [8, 32], strides = [1, 1]} : vector<8x96xf32> to vector<8x32xf32>
    %49 = vector.shape_cast %48 : vector<8x32xf32> to vector<1x8x32xf32>
    %50 = vector.extract_strided_slice %45 {offsets = [0, 64], sizes = [8, 32], strides = [1, 1]} : vector<8x96xf32> to vector<8x32xf32>
    %51 = vector.shape_cast %50 : vector<8x32xf32> to vector<1x8x32xf32>
    %52 = vector.extract_strided_slice %47 {offsets = [0, 0, 0], sizes = [1, 8, 8], strides = [1, 1, 1]} : vector<1x8x32xf32> to vector<1x8x8xf32>
    %53 = vector.extract_strided_slice %49 {offsets = [0, 0, 0], sizes = [1, 8, 8], strides = [1, 1, 1]} : vector<1x8x32xf32> to vector<1x8x8xf32>
    %54 = vector.extract_strided_slice %51 {offsets = [0, 0, 0], sizes = [1, 8, 8], strides = [1, 1, 1]} : vector<1x8x32xf32> to vector<1x8x8xf32>
    "tpu.trace_start"() <{level = 10 : i32, message = "bqd,bkd->bqk"}> : () -> ()
    %cst_21 = arith.constant dense<0.000000e+00> : vector<1x8x8xf32>
    %55 = tpu.matmul %52, %53, %cst_21 {dimension_numbers = #tpu.dot_dimension_numbers<[2], [2], [1], [1], [0, 0, 0, 1, 1, 1], [0], [0]>} : vector<1x8x8xf32>, vector<1x8x8xf32>, vector<1x8x8xf32> -> vector<1x8x8xf32>
    "tpu.trace_stop"() : () -> ()
    %cst_22 = arith.constant 0.353553385 : f32
    %56 = vector.broadcast %cst_22 : f32 to vector<1x8x8xf32>
    %57 = arith.mulf %55, %56 : vector<1x8x8xf32>
    %cst_23 = arith.constant dense<0xFF800000> : vector<1x8xf32>
    %58 = vector.multi_reduction <maximumf>, %57, %cst_23 [2] : vector<1x8x8xf32> to vector<1x8xf32>
    %59 = vector.shape_cast %58 : vector<1x8xf32> to vector<1x8x1xf32>
    %60 = vector.broadcast %59 : vector<1x8x1xf32> to vector<1x8x8xf32>
    %61 = arith.subf %57, %60 : vector<1x8x8xf32>
    %62 = math.exp %61 : vector<1x8x8xf32>
    %cst_24 = arith.constant dense<0.000000e+00> : vector<1x8xf32>
    %63 = vector.multi_reduction <add>, %62, %cst_24 [2] : vector<1x8x8xf32> to vector<1x8xf32>
    %64 = vector.shape_cast %63 : vector<1x8xf32> to vector<1x8x1xf32>
    %65 = vector.broadcast %64 : vector<1x8x1xf32> to vector<1x8x8xf32>
    %66 = arith.divf %62, %65 : vector<1x8x8xf32>
    "tpu.trace_start"() <{level = 10 : i32, message = "bqk,bkd->bqd"}> : () -> ()
    %cst_25 = arith.constant dense<0.000000e+00> : vector<1x8x8xf32>
    %67 = tpu.matmul %66, %54, %cst_25 {dimension_numbers = #tpu.dot_dimension_numbers<[2], [1], [1], [2], [0, 0, 0, 1, 1, 2], [0], [0]>} : vector<1x8x8xf32>, vector<1x8x8xf32>, vector<1x8x8xf32> -> vector<1x8x8xf32>
    "tpu.trace_stop"() : () -> ()
    %68 = vector.extract_strided_slice %47 {offsets = [0, 0, 8], sizes = [1, 8, 8], strides = [1, 1, 1]} : vector<1x8x32xf32> to vector<1x8x8xf32>
    %69 = vector.extract_strided_slice %49 {offsets = [0, 0, 8], sizes = [1, 8, 8], strides = [1, 1, 1]} : vector<1x8x32xf32> to vector<1x8x8xf32>
    %70 = vector.extract_strided_slice %51 {offsets = [0, 0, 8], sizes = [1, 8, 8], strides = [1, 1, 1]} : vector<1x8x32xf32> to vector<1x8x8xf32>
    "tpu.trace_start"() <{level = 10 : i32, message = "bqd,bkd->bqk"}> : () -> ()
    %cst_26 = arith.constant dense<0.000000e+00> : vector<1x8x8xf32>
    %71 = tpu.matmul %68, %69, %cst_26 {dimension_numbers = #tpu.dot_dimension_numbers<[2], [2], [1], [1], [0, 0, 0, 1, 1, 1], [0], [0]>} : vector<1x8x8xf32>, vector<1x8x8xf32>, vector<1x8x8xf32> -> vector<1x8x8xf32>
    "tpu.trace_stop"() : () -> ()
    %cst_27 = arith.constant 0.353553385 : f32
    %72 = vector.broadcast %cst_27 : f32 to vector<1x8x8xf32>
    %73 = arith.mulf %71, %72 : vector<1x8x8xf32>
    %cst_28 = arith.constant dense<0xFF800000> : vector<1x8xf32>
    %74 = vector.multi_reduction <maximumf>, %73, %cst_28 [2] : vector<1x8x8xf32> to vector<1x8xf32>
    %75 = vector.shape_cast %74 : vector<1x8xf32> to vector<1x8x1xf32>
    %76 = vector.broadcast %75 : vector<1x8x1xf32> to vector<1x8x8xf32>
    %77 = arith.subf %73, %76 : vector<1x8x8xf32>
    %78 = math.exp %77 : vector<1x8x8xf32>
    %cst_29 = arith.constant dense<0.000000e+00> : vector<1x8xf32>
    %79 = vector.multi_reduction <add>, %78, %cst_29 [2] : vector<1x8x8xf32> to vector<1x8xf32>
    %80 = vector.shape_cast %79 : vector<1x8xf32> to vector<1x8x1xf32>
    %81 = vector.broadcast %80 : vector<1x8x1xf32> to vector<1x8x8xf32>
    %82 = arith.divf %78, %81 : vector<1x8x8xf32>
    "tpu.trace_start"() <{level = 10 : i32, message = "bqk,bkd->bqd"}> : () -> ()
    %cst_30 = arith.constant dense<0.000000e+00> : vector<1x8x8xf32>
    %83 = tpu.matmul %82, %70, %cst_30 {dimension_numbers = #tpu.dot_dimension_numbers<[2], [1], [1], [2], [0, 0, 0, 1, 1, 2], [0], [0]>} : vector<1x8x8xf32>, vector<1x8x8xf32>, vector<1x8x8xf32> -> vector<1x8x8xf32>
    "tpu.trace_stop"() : () -> ()
    %84 = vector.extract_strided_slice %47 {offsets = [0, 0, 16], sizes = [1, 8, 8], strides = [1, 1, 1]} : vector<1x8x32xf32> to vector<1x8x8xf32>
    %85 = vector.extract_strided_slice %49 {offsets = [0, 0, 16], sizes = [1, 8, 8], strides = [1, 1, 1]} : vector<1x8x32xf32> to vector<1x8x8xf32>
    %86 = vector.extract_strided_slice %51 {offsets = [0, 0, 16], sizes = [1, 8, 8], strides = [1, 1, 1]} : vector<1x8x32xf32> to vector<1x8x8xf32>
    "tpu.trace_start"() <{level = 10 : i32, message = "bqd,bkd->bqk"}> : () -> ()
    %cst_31 = arith.constant dense<0.000000e+00> : vector<1x8x8xf32>
    %87 = tpu.matmul %84, %85, %cst_31 {dimension_numbers = #tpu.dot_dimension_numbers<[2], [2], [1], [1], [0, 0, 0, 1, 1, 1], [0], [0]>} : vector<1x8x8xf32>, vector<1x8x8xf32>, vector<1x8x8xf32> -> vector<1x8x8xf32>
    "tpu.trace_stop"() : () -> ()
    %cst_32 = arith.constant 0.353553385 : f32
    %88 = vector.broadcast %cst_32 : f32 to vector<1x8x8xf32>
    %89 = arith.mulf %87, %88 : vector<1x8x8xf32>
    %cst_33 = arith.constant dense<0xFF800000> : vector<1x8xf32>
    %90 = vector.multi_reduction <maximumf>, %89, %cst_33 [2] : vector<1x8x8xf32> to vector<1x8xf32>
    %91 = vector.shape_cast %90 : vector<1x8xf32> to vector<1x8x1xf32>
    %92 = vector.broadcast %91 : vector<1x8x1xf32> to vector<1x8x8xf32>
    %93 = arith.subf %89, %92 : vector<1x8x8xf32>
    %94 = math.exp %93 : vector<1x8x8xf32>
    %cst_34 = arith.constant dense<0.000000e+00> : vector<1x8xf32>
    %95 = vector.multi_reduction <add>, %94, %cst_34 [2] : vector<1x8x8xf32> to vector<1x8xf32>
    %96 = vector.shape_cast %95 : vector<1x8xf32> to vector<1x8x1xf32>
    %97 = vector.broadcast %96 : vector<1x8x1xf32> to vector<1x8x8xf32>
    %98 = arith.divf %94, %97 : vector<1x8x8xf32>
    "tpu.trace_start"() <{level = 10 : i32, message = "bqk,bkd->bqd"}> : () -> ()
    %cst_35 = arith.constant dense<0.000000e+00> : vector<1x8x8xf32>
    %99 = tpu.matmul %98, %86, %cst_35 {dimension_numbers = #tpu.dot_dimension_numbers<[2], [1], [1], [2], [0, 0, 0, 1, 1, 2], [0], [0]>} : vector<1x8x8xf32>, vector<1x8x8xf32>, vector<1x8x8xf32> -> vector<1x8x8xf32>
    "tpu.trace_stop"() : () -> ()
    %100 = vector.extract_strided_slice %47 {offsets = [0, 0, 24], sizes = [1, 8, 8], strides = [1, 1, 1]} : vector<1x8x32xf32> to vector<1x8x8xf32>
    %101 = vector.extract_strided_slice %49 {offsets = [0, 0, 24], sizes = [1, 8, 8], strides = [1, 1, 1]} : vector<1x8x32xf32> to vector<1x8x8xf32>
    %102 = vector.extract_strided_slice %51 {offsets = [0, 0, 24], sizes = [1, 8, 8], strides = [1, 1, 1]} : vector<1x8x32xf32> to vector<1x8x8xf32>
    "tpu.trace_start"() <{level = 10 : i32, message = "bqd,bkd->bqk"}> : () -> ()
    %cst_36 = arith.constant dense<0.000000e+00> : vector<1x8x8xf32>
    %103 = tpu.matmul %100, %101, %cst_36 {dimension_numbers = #tpu.dot_dimension_numbers<[2], [2], [1], [1], [0, 0, 0, 1, 1, 1], [0], [0]>} : vector<1x8x8xf32>, vector<1x8x8xf32>, vector<1x8x8xf32> -> vector<1x8x8xf32>
    "tpu.trace_stop"() : () -> ()
    %cst_37 = arith.constant 0.353553385 : f32
    %104 = vector.broadcast %cst_37 : f32 to vector<1x8x8xf32>
    %105 = arith.mulf %103, %104 : vector<1x8x8xf32>
    %cst_38 = arith.constant dense<0xFF800000> : vector<1x8xf32>
    %106 = vector.multi_reduction <maximumf>, %105, %cst_38 [2] : vector<1x8x8xf32> to vector<1x8xf32>
    %107 = vector.shape_cast %106 : vector<1x8xf32> to vector<1x8x1xf32>
    %108 = vector.broadcast %107 : vector<1x8x1xf32> to vector<1x8x8xf32>
    %109 = arith.subf %105, %108 : vector<1x8x8xf32>
    %110 = math.exp %109 : vector<1x8x8xf32>
    %cst_39 = arith.constant dense<0.000000e+00> : vector<1x8xf32>
    %111 = vector.multi_reduction <add>, %110, %cst_39 [2] : vector<1x8x8xf32> to vector<1x8xf32>
    %112 = vector.shape_cast %111 : vector<1x8xf32> to vector<1x8x1xf32>
    %113 = vector.broadcast %112 : vector<1x8x1xf32> to vector<1x8x8xf32>
    %114 = arith.divf %110, %113 : vector<1x8x8xf32>
    "tpu.trace_start"() <{level = 10 : i32, message = "bqk,bkd->bqd"}> : () -> ()
    %cst_40 = arith.constant dense<0.000000e+00> : vector<1x8x8xf32>
    %115 = tpu.matmul %114, %102, %cst_40 {dimension_numbers = #tpu.dot_dimension_numbers<[2], [1], [1], [2], [0, 0, 0, 1, 1, 2], [0], [0]>} : vector<1x8x8xf32>, vector<1x8x8xf32>, vector<1x8x8xf32> -> vector<1x8x8xf32>
    "tpu.trace_stop"() : () -> ()
    %116 = tpu.concatenate %67, %83, %99, %115 in 2 : vector<1x8x8xf32>, vector<1x8x8xf32>, vector<1x8x8xf32>, vector<1x8x8xf32> -> vector<1x8x32xf32>
    %117 = vector.shape_cast %116 : vector<1x8x32xf32> to vector<8x32xf32>
    %c0_41 = arith.constant 0 : index
    %c0_42 = arith.constant 0 : index
    %118 = vector.load %arg7[%c0_41, %c0_42] : memref<32x32xf32, #tpu.memory_space<vmem>>, vector<32x32xf32>
    %cst_43 = arith.constant dense<0.000000e+00> : vector<8x32xf32>
    %119 = tpu.matmul %117, %118, %cst_43 {dimension_numbers = #tpu.dot_dimension_numbers<[1], [0], [0], [1], [0, 0, 1, 1], [], []>} : vector<8x32xf32>, vector<32x32xf32>, vector<8x32xf32> -> vector<8x32xf32>
    %c0_44 = arith.constant 0 : index
    %c0_45 = arith.constant 0 : index
    %120 = vector.load %arg8[%c0_44, %c0_45] : memref<1x32xf32, #tpu.memory_space<vmem>>, vector<1x32xf32>
    %121 = vector.broadcast %120 : vector<1x32xf32> to vector<8x32xf32>
    %122 = arith.addf %119, %121 : vector<8x32xf32>
    %123 = arith.mulf %17, %122 : vector<8x32xf32>
    %124 = arith.addf %1, %123 : vector<8x32xf32>
    %cst_46 = arith.constant dense<0.000000e+00> : vector<8xf32>
    %125 = vector.multi_reduction <add>, %124, %cst_46 [1] : vector<8x32xf32> to vector<8xf32>
    %126 = vector.shape_cast %125 : vector<8xf32> to vector<8x1xf32>
    %cst_47 = arith.constant 3.200000e+01 : f32
    %127 = vector.broadcast %cst_47 : f32 to vector<8x1xf32>
    %128 = arith.divf %126, %127 : vector<8x1xf32>
    %129 = vector.broadcast %128 : vector<8x1xf32> to vector<8x32xf32>
    %130 = arith.subf %124, %129 : vector<8x32xf32>
    %131 = arith.mulf %130, %130 : vector<8x32xf32>
    %cst_48 = arith.constant dense<0.000000e+00> : vector<8xf32>
    %132 = vector.multi_reduction <add>, %131, %cst_48 [1] : vector<8x32xf32> to vector<8xf32>
    %133 = vector.shape_cast %132 : vector<8xf32> to vector<8x1xf32>
    %cst_49 = arith.constant 3.200000e+01 : f32
    %134 = vector.broadcast %cst_49 : f32 to vector<8x1xf32>
    %135 = arith.divf %133, %134 : vector<8x1xf32>
    %cst_50 = arith.constant 9.99999997E-7 : f32
    %136 = vector.broadcast %cst_50 : f32 to vector<8x1xf32>
    %137 = arith.addf %135, %136 : vector<8x1xf32>
    %138 = math.rsqrt %137 : vector<8x1xf32>
    %139 = vector.broadcast %138 : vector<8x1xf32> to vector<8x32xf32>
    %140 = arith.mulf %130, %139 : vector<8x32xf32>
    %cst_51 = arith.constant 1.000000e+00 : f32
    %141 = vector.broadcast %cst_51 : f32 to vector<8x32xf32>
    %142 = arith.addf %141, %19 : vector<8x32xf32>
    %143 = arith.mulf %140, %142 : vector<8x32xf32>
    %144 = arith.addf %143, %18 : vector<8x32xf32>
    %c0_52 = arith.constant 0 : index
    %c0_53 = arith.constant 0 : index
    %145 = vector.load %arg9[%c0_52, %c0_53] : memref<32x64xf32, #tpu.memory_space<vmem>>, vector<32x64xf32>
    %cst_54 = arith.constant dense<0.000000e+00> : vector<8x64xf32>
    %146 = tpu.matmul %144, %145, %cst_54 {dimension_numbers = #tpu.dot_dimension_numbers<[1], [0], [0], [1], [0, 0, 1, 1], [], []>} : vector<8x32xf32>, vector<32x64xf32>, vector<8x64xf32> -> vector<8x64xf32>
    %c0_55 = arith.constant 0 : index
    %c0_56 = arith.constant 0 : index
    %147 = vector.load %arg10[%c0_55, %c0_56] : memref<1x64xf32, #tpu.memory_space<vmem>>, vector<1x64xf32>
    %148 = vector.broadcast %147 : vector<1x64xf32> to vector<8x64xf32>
    %149 = arith.addf %146, %148 : vector<8x64xf32>
    %150 = arith.mulf %149, %149 : vector<8x64xf32>
    %151 = arith.mulf %149, %150 : vector<8x64xf32>
    %cst_57 = arith.constant 4.471500e-02 : f32
    %152 = vector.broadcast %cst_57 : f32 to vector<8x64xf32>
    %153 = arith.mulf %152, %151 : vector<8x64xf32>
    %154 = arith.addf %149, %153 : vector<8x64xf32>
    %cst_58 = arith.constant 0.797884583 : f32
    %155 = vector.broadcast %cst_58 : f32 to vector<8x64xf32>
    %156 = arith.mulf %155, %154 : vector<8x64xf32>
    %157 = math.tanh %156 : vector<8x64xf32>
    %cst_59 = arith.constant 1.000000e+00 : f32
    %158 = vector.broadcast %cst_59 : f32 to vector<8x64xf32>
    %159 = arith.addf %158, %157 : vector<8x64xf32>
    %cst_60 = arith.constant 5.000000e-01 : f32
    %160 = vector.broadcast %cst_60 : f32 to vector<8x64xf32>
    %161 = arith.mulf %160, %159 : vector<8x64xf32>
    %162 = arith.mulf %149, %161 : vector<8x64xf32>
    %c0_61 = arith.constant 0 : index
    %c0_62 = arith.constant 0 : index
    %163 = vector.load %arg11[%c0_61, %c0_62] : memref<64x32xf32, #tpu.memory_space<vmem>>, vector<64x32xf32>
    %cst_63 = arith.constant dense<0.000000e+00> : vector<8x32xf32>
    %164 = tpu.matmul %162, %163, %cst_63 {dimension_numbers = #tpu.dot_dimension_numbers<[1], [0], [0], [1], [0, 0, 1, 1], [], []>} : vector<8x64xf32>, vector<64x32xf32>, vector<8x32xf32> -> vector<8x32xf32>
    %c0_64 = arith.constant 0 : index
    %c0_65 = arith.constant 0 : index
    %165 = vector.load %arg12[%c0_64, %c0_65] : memref<1x32xf32, #tpu.memory_space<vmem>>, vector<1x32xf32>
    %166 = vector.broadcast %165 : vector<1x32xf32> to vector<8x32xf32>
    %167 = arith.addf %164, %166 : vector<8x32xf32>
    %168 = arith.mulf %20, %167 : vector<8x32xf32>
    %169 = arith.addf %124, %168 : vector<8x32xf32>
    %170 = vector.shape_cast %169 : vector<8x32xf32> to vector<1x8x32xf32>
    %c0_66 = arith.constant 0 : index
    %c0_67 = arith.constant 0 : index
    %c0_68 = arith.constant 0 : index
    %171 = vector.load %arg13[%c0_66, %c0_67, %c0_68] : memref<1x8x32xf32, #tpu.memory_space<vmem>>, vector<1x8x32xf32>
    tpu.vector_store %arg13[%c0_66, %c0_67, %c0_68], %170 {strides = array<i32>} : memref<1x8x32xf32, #tpu.memory_space<vmem>>, vector<1x8x32xf32>,
    return
  }
  func.func @transform_0(%arg0: i32) -> (i32, i32, i32) {
    %c0_i32 = arith.constant 0 : i32
    %c0_i32_0 = arith.constant 0 : i32
    %c0_i32_1 = arith.constant 0 : i32
    return %arg0, %c0_i32, %c0_i32_0 : i32, i32, i32
  }
  func.func @transform_1(%arg0: i32) -> (i32, i32, i32) {
    %c0_i32 = arith.constant 0 : i32
    %c0_i32_0 = arith.constant 0 : i32
    %c0_i32_1 = arith.constant 0 : i32
    return %arg0, %c0_i32, %c0_i32_0 : i32, i32, i32
  }
  func.func @transform_2(%arg0: i32) -> (i32, i32) {
    %c0_i32 = arith.constant 0 : i32
    %c0_i32_0 = arith.constant 0 : i32
    %c0_i32_1 = arith.constant 0 : i32
    return %c0_i32, %c0_i32_0 : i32, i32
  }
  func.func @transform_3(%arg0: i32) -> (i32, i32) {
    %c0_i32 = arith.constant 0 : i32
    %c0_i32_0 = arith.constant 0 : i32
    %c0_i32_1 = arith.constant 0 : i32
    return %c0_i32, %c0_i32_0 : i32, i32
  }
  func.func @transform_4(%arg0: i32) -> (i32, i32) {
    %c0_i32 = arith.constant 0 : i32
    %c0_i32_0 = arith.constant 0 : i32
    %c0_i32_1 = arith.constant 0 : i32
    return %c0_i32, %c0_i32_0 : i32, i32
  }
  func.func @transform_5(%arg0: i32) -> (i32, i32) {
    %c0_i32 = arith.constant 0 : i32
    %c0_i32_0 = arith.constant 0 : i32
    %c0_i32_1 = arith.constant 0 : i32
    return %c0_i32, %c0_i32_0 : i32, i32
  }
  func.func @transform_6(%arg0: i32) -> (i32, i32) {
    %c0_i32 = arith.constant 0 : i32
    %c0_i32_0 = arith.constant 0 : i32
    %c0_i32_1 = arith.constant 0 : i32
    return %c0_i32, %c0_i32_0 : i32, i32
  }
  func.func @transform_7(%arg0: i32) -> (i32, i32) {
    %c0_i32 = arith.constant 0 : i32
    %c0_i32_0 = arith.constant 0 : i32
    %c0_i32_1 = arith.constant 0 : i32
    return %c0_i32, %c0_i32_0 : i32, i32
  }
  func.func @transform_8(%arg0: i32) -> (i32, i32) {
    %c0_i32 = arith.constant 0 : i32
    %c0_i32_0 = arith.constant 0 : i32
    %c0_i32_1 = arith.constant 0 : i32
    return %c0_i32, %c0_i32_0 : i32, i32
  }
  func.func @transform_9(%arg0: i32) -> (i32, i32) {
    %c0_i32 = arith.constant 0 : i32
    %c0_i32_0 = arith.constant 0 : i32
    %c0_i32_1 = arith.constant 0 : i32
    return %c0_i32, %c0_i32_0 : i32, i32
  }
  func.func @transform_10(%arg0: i32) -> (i32, i32) {
    %c0_i32 = arith.constant 0 : i32
    %c0_i32_0 = arith.constant 0 : i32
    %c0_i32_1 = arith.constant 0 : i32
    return %c0_i32, %c0_i32_0 : i32, i32
  }
  func.func @transform_11(%arg0: i32) -> (i32, i32) {
    %c0_i32 = arith.constant 0 : i32
    %c0_i32_0 = arith.constant 0 : i32
    %c0_i32_1 = arith.constant 0 : i32
    return %c0_i32, %c0_i32_0 : i32, i32
  }
  func.func @transform_12(%arg0: i32) -> (i32, i32, i32) {
    %c0_i32 = arith.constant 0 : i32
    %c0_i32_0 = arith.constant 0 : i32
    %c0_i32_1 = arith.constant 0 : i32
    return %arg0, %c0_i32, %c0_i32_0 : i32, i32, i32
  }
}

</mosaic_0001>

<bundles_post_ra>
// kernel: tpu_custom_call.1
= control target key start
LH: loop header
LB: loop body
LE: loop exit
PB: predicated region body
PF: predicated region fallthrough
CT: control target
= control target key end

     0   :  { %s2151_s0 = inlined_call_operand.hbm [shape: f32[2,8,32], index: 0, kind: input, shape index: {}]   ;;  %s2152_s1 = inlined_call_operand.hbm [shape: f32[2,8,32], index: 1, kind: input, shape index: {}]   ;;  %s2153_s2 = inlined_call_operand.vmem [shape: f32[32,192], index: 2, kind: input, shape index: {}]   ;;  %s2154_s3 = inlined_call_operand.hbm [shape: f32[1,192], index: 3, kind: input, shape index: {}]   ;;  %s2155_s4 = inlined_call_operand.vmem [shape: f32[32,96], index: 4, kind: input, shape index: {}]   ;;  %s2156_s5 = inlined_call_operand.vmem [shape: f32[1,96], index: 5, kind: input, shape index: {}]   ;;  %s2157_s6 = inlined_call_operand.hbm [shape: f32[32,32], index: 6, kind: input, shape index: {}]   ;;  %s2158_s7 = inlined_call_operand.vmem [shape: f32[1,32], index: 7, kind: input, shape index: {}]   ;;  %s2159_s8 = inlined_call_operand.hbm [shape: f32[32,64], index: 8, kind: input, shape index: {}]   ;;  %s2160_s9 = inlined_call_operand.vmem [shape: f32[1,64], index: 9, kind: input, shape index: {}]   ;;  %s2161_s10 = inlined_call_operand.vmem [shape: f32[64,32], index: 10, kind: input, shape index: {}]   ;;  %s2162_s11 = inlined_call_operand.vmem [shape: f32[1,32], index: 11, kind: input, shape index: {}]   ;;  %s2163_s12 = inlined_call_operand.hbm [shape: f32[2,8,32], index: 12, kind: output, shape index: {}]  }
   0x1   :  { %2173 = sst [smem:[#allocation24_spill]] %s2154_s3 }
   0x2   :  { %2174 = sst [smem:[#allocation25_spill]] %s2157_s6 }
   0x3   :  { %2175 = sst [smem:[#allocation26_spill]] %s2159_s8 }
   0x4   :  { %2176 = sst [smem:[#allocation27_spill]] %s2163_s12 }
   0x5   :  { %17 = vsyncpa [#allocation3], 0 }
   0x6   :  { %19 = vsyncpa [#allocation3 + $0x1], 0 }
   0x7   :  { %20 = vsyncpa [#allocation6], 0 }
   0x8   :  { %22 = vsyncpa [#allocation6 + $0x1], 0 }
   0x9   :  { %23 = vsyncpa [#allocation9], 0 }
   0xa   :  { %24 = vsyncpa [#allocation4], 0 }
   0xb   :  { %26 = vsyncpa [#allocation4 + $0x1], 0  ;;  %s1779_s21 = smov 0   ;;  %s1781_s22 = smov 0  }
   0xc   :  { %s1783_s23 = smov 0   ;;  %s1785_s24 = smov 0  }
   0xd LB: > { %2177 = sst [smem:[#allocation17_spill]] %s1679_s21  ;;  %s1800_s25 = sadd.s32 4294967295, %s1691_s24   ;;  %s1691_s24 = sphi %s1785_s24, %s2199_s24   ;;  %s1687_s23 = sphi %s1783_s23, %s2201_s23   ;;  %s1683_s22 = sphi %s1781_s22, %s2203_s22   ;;  %s1679_s21 = sphi %s1779_s21, %s2202_s21  }
   0xe   : > { %2178 = sst [smem:[#allocation18_spill]] %s1687_s23  ;;  %s1291_s26 = sadd.s32 4294967294, %s1691_s24  }
   0xf   : > { %2179 = sst [smem:[#allocation19_spill]] %s1691_s24  ;;  %p52_p0 = scmp.ne.s32.totalorder %s1683_s22, %s1679_s21 }
  0x10   : > { %p53_p1 = scmp.eq.s32.totalorder %s1800_s25, 0  ;;  %p312_p2 = scmp.eq.s32.totalorder %s1800_s25, 1 }
  0x11   : > { %p318_p3 = scmp.eq.s32.totalorder %s1291_s26, 1  ;;  %p1292_p5 = scmp.ge.s32.totalorder %s1691_s24, 1 }
  0x12   : > { %p1809_p4 = por %p53_p1, %p52_p0  ;;  %p325_p7 = scmp.lt.s32.totalorder %s1691_s24, 3 }
  0x13   : > { %p1814_p6 = por %p318_p3, %p52_p0  ;;  %s2183_s3 = sld [smem:[#allocation24_spill]] }
  0x14   : > { %p1822_p8 = pnand %p1292_p5, %p325_p7  ;;  %s1693_s15 = smov [#allocation7]  }
  0x15   : > { %s2181_s28 = scalar_select %p1814_p6, 1, 0 }
  0x16   : > { %p1349_p10 = pneg %p1822_p8  ;;  %s342_s16 = sshll.u32 %s1693_s15, 4  ;;  %s343_s16 = int_to_ptr.vmem [resolvable:$true] %s342_s16 }
  0x17   : > { %2182 = sst [smem:[#allocation20_spill]] %s2181_s28  ;;  %s1694_s26 = smov [#allocation8]  }
  0x18   : > { %s2185_s6 = sld [smem:[#allocation25_spill]]  ;;  %p1834_p11 = pnand %p1349_p10, %p53_p1 }
  0x19   : > { %s340_s13 = sshll.u32 %s2183_s3, 4  ;;  %s359_s29 = sshll.u32 %s1694_s26, 4  ;;  %s341_s13 = int_to_ptr.hbm [resolvable:$true] %s340_s13  ;;  %s360_s29 = int_to_ptr.vmem [resolvable:$true] %s359_s29 }
  0x1a   : > { %1352 = dma.hbm_to_vmem [thread:$0]  (!%p1834_p11), %s341_s13, 32, %s343_s16, [#allocation6]  }
  0x1b   : > { %s1695_s30 = smov 128   ;;  %s1696_s15 = smov 8  }
  0x1c   : > { %s2187_s8 = sld [smem:[#allocation26_spill]]  ;;  %s1697_s26 = smov [#allocation10]  }
  0x1d   : > { %s1848_s13 = sadd.s32 1, %s1691_s24   ;;  %s39_s28 = sadd.s32 1, %s1687_s23 }
  0x1e   : > { %s357_s19 = sshll.u32 %s2185_s6, 4  ;;  %s376_s6 = sshll.u32 %s1697_s26, 4  ;;  %s358_s19 = int_to_ptr.hbm [resolvable:$true] %s357_s19  ;;  %s377_s6 = int_to_ptr.vmem [resolvable:$true] %s376_s6 }
  0x1f   : > { %1355 = dma.hbm_to_vmem [thread:$0]  (!%p1834_p11), %s358_s19, 512, %s360_s29, [#allocation9], %s1695_s30, %s1695_s30, %s1696_s15  }
  0x20   : > { %2188 = sst [smem:[#allocation21_spill]] %s1848_s13  ;;  %s36_s16 = ssub.s32 %s1691_s24, %s1848_s13 }
  0x21   : > { %p37_p12 = scmp.eq.s32.totalorder %s36_s16, 0  ;;  %p46_p13 = scmp.ne.s32.totalorder %s1687_s23, %s1683_s22 }
  0x22   : > { %s374_s3 = sshll.u32 %s2187_s8, 4  ;;  %p47_p0 = scmp.eq.s32.totalorder %s1691_s24, 0  ;;  %s375_s3 = int_to_ptr.hbm [resolvable:$true] %s374_s3 }
  0x23   : > { %1358 = dma.hbm_to_vmem [thread:$0]  (!%p1834_p11), %s375_s3, 512, %s377_s6, [#allocation9], %s1695_s30, %s1695_s30, %s1696_s15  }
  0x24   : > { %p1373_p3 = scmp.lt.s32.totalorder %s1691_s24, 2  ;;  %p48_p5 = por %p47_p0, %p46_p13 }
  0x25   : > { %s1858_s19 = scalar_select %p37_p12, %s1687_s23, %s39_s28  }
  0x26   : > { %p1862_p7 = por %p312_p2, %p46_p13  ;;  %s399_s3 = sand.u32 1, %s1687_s23  }
  0x27   : > { %2189 = sst [smem:[#allocation22_spill]] %s1858_s19  ;;  %s1298_s6 = sshll.u32 %s1691_s24, 3 }
  0x28   : > { %s2190_s29 = scalar_select %p1862_p7, 1, 0 }
  0x29   : > { %s1297_s20 = sshll.u32 %s399_s3, 3  ;;  %s407_s17 = scalar_lea.hbm %s2151_s0, %s1298_s6 }
  0x2a   : > { %2191 = sst [smem:[#allocation23_spill]] %s2190_s29  ;;  %s409_s18 = sshll.u32 %s407_s17, 4  ;;  %s410_s18 = int_to_ptr.hbm [resolvable:$true] %s409_s18 }
  0x2b   : > { %s403_s26 = scalar_lea.vmem [#allocation2], %s1297_s20  ;;  %p1873_p10 = pnand %p1373_p3, %p48_p5 }
  0x2c   : > { %s411_s16 = sshll.u32 %s403_s26, 4  ;;  %s426_s23 = scalar_lea.hbm %s2152_s1, %s1298_s6  ;;  %s412_s16 = int_to_ptr.vmem [resolvable:$true] %s411_s16 }
  0x2d   : > { %s418_s13 = sand.u32 1, %s1691_s24   ;;  %s400_s21 = scalar_lea.sflag [#allocation3], %s399_s3 }
  0x2e   : > { %s1553_s30 = sshra.s32 %s410_s18, 4  ;;  %p1557_p11 = pneg %p1873_p10  ;;  %s1554_s30 = int_to_ptr.hbm [resolvable:$true] %s1553_s30 }
  0x2f   : > { %s1555_s15 = scalar_lea.hbm %s1554_s30, 8  ;;  %s1560_s12 = scalar_lea.hbm %s2151_s0, 16 }
  0x30   : > { %p1556_p2 = scmp.ne.s32.totalorder %s1554_s30, %s1555_s15  ;;  %p1561_p0 = scmp.lt.s32.totalorder %s1554_s30, %s2151_s0 }
  0x31   : > { %p1562_p3 = scmp.lt.s32.totalorder %s1560_s12, %s1555_s15 }
  0x32   : > { %p1558_p12 = pnand %p1557_p11, %p1556_p2 }
  0x33   : > { %p1563_p5 = por %p1562_p3, %p1561_p0 }
  0x34   : > { %p1559_p13 = pneg %p1558_p12 }
  0x36   : > { %p1564_p9 = pnand %p1563_p5, %p1559_p13 }
  0x38   : > { %1567 = shalt.err (!%p1564_p9)
}
  0x39   : > { %1362 = dma.hbm_to_vmem [thread:$0]  (!%p1873_p10), %s410_s18, 128, %s412_s16, %s400_s21  }
  0x3a   : > { %s428_s3 = sshll.u32 %s426_s23, 4  ;;  %s422_s6 = scalar_lea.vmem [#allocation5], %s1297_s20  ;;  %s429_s3 = int_to_ptr.hbm [resolvable:$true] %s428_s3 }
  0x3b   : > { %s430_s24 = sshll.u32 %s422_s6, 4  ;;  %s419_s29 = scalar_lea.sflag [#allocation6], %s418_s13  ;;  %s431_s24 = int_to_ptr.vmem [resolvable:$true] %s430_s24 }
  0x3c   : > { %s1583_s17 = sshra.s32 %s429_s3, 4  ;;  %s1590_s15 = scalar_lea.hbm %s2152_s1, 16  ;;  %s1584_s17 = int_to_ptr.hbm [resolvable:$true] %s1583_s17 }
  0x3d   : > { %s1585_s26 = scalar_lea.hbm %s1584_s17, 8  ;;  %p1591_p9 = scmp.lt.s32.totalorder %s1584_s17, %s2152_s1 }
  0x3e   : > { %p1586_p2 = scmp.ne.s32.totalorder %s1584_s17, %s1585_s26  ;;  %p1592_p13 = scmp.lt.s32.totalorder %s1590_s15, %s1585_s26 }
  0x40   : > { %p1588_p12 = pnand %p1586_p2, %p1557_p11  ;;  %p1593_p3 = por %p1592_p13, %p1591_p9 }
  0x42   : > { %p1589_p0 = pneg %p1588_p12 }
  0x44   : > { %p1594_p5 = pnand %p1593_p3, %p1589_p0 }
  0x46   : > { %1597 = shalt.err (!%p1594_p5)
}
  0x47   : > { %1365 = dma.hbm_to_vmem [thread:$0]  (!%p1873_p10), %s429_s3, 128, %s431_s24, %s419_s29  }
  0x48   : > { %439 = sbr.rel (%p1822_p8) target bundleno = 2354 (0x932), region = 68  ;;  %s1908_s23 = sand.u32 (!%p1822_p8), 1, %s1683_s22  }
  0x49   : > { %s1911_s13 = sshll.u32 (!%p1822_p8), %s1908_s23, 3  ;;  %s442_s20 = scalar_lea.sflag (!%p1822_p8), [#allocation3], %s1908_s23 }
  0x4a   : > { %s445_s18 = scalar_lea.vmem (!%p1822_p8), [#allocation2], %s1911_s13 }
  0x4d   : > { %1658 = dma.done.wait (%p1809_p4), %s442_s20, 128  }
  0x4e   : > { %1660 = vsyncadd (%p1809_p4), %s442_s20, 4294967168  ;;  %s451_s24 = sand.u32 1, %s1800_s25   ;;  %s455_s29 = scalar_lea.vmem [#allocation5], %s1911_s13 }
  0x4f   : > { %s452_s14 = scalar_lea.sflag [#allocation6], %s451_s24 }
  0x50   : > { %1662 = dma.done.wait (%p1809_p4), %s452_s14, 128  }
  0x51   : > { %1664 = vsyncadd (%p1809_p4), %s452_s14, 4294967168 }
  0x52   : > { %1666 = dma.done.wait (%p53_p1), [#allocation6], 32  }
  0x53   : > { %1668 = vsyncadd (%p53_p1), [#allocation6], 4294967264 }
  0x54   : > { %1670 = dma.done.wait (%p53_p1), [#allocation9], 1024  }
  0x55   : > { %1672 = vsyncadd (%p53_p1), [#allocation9], 4294966272  ;;  %vm553_vm0 = vcmask 261120   ;;  %v1933_v0 = vld [vmem:[%s445_s18] sm:$0xff]  ;;  %v545_v1 = vld [vmem:[%s2153_s2 + $0x30] sm:$0xff]  ;;  %v1698_v21 = vmov 32.0  }
  0x56   : > { %v543_v2 = vld [vmem:[%s2153_s2 + $0x20] sm:$0xff]  ;;  %v597_v3 = vsel %vm553_vm0, %v1933_v0, 0.0  ;;  %569 = vmatpush.msra.mxu1 %v545_v1  ;;  %v541_v4 = vld [vmem:[%s2153_s2 + $0x10] sm:$0xff]  ;;  %s1699_s12 = smov 96   ;;  %v636_v38 = vld [vmem:[%s2155_s4 + $0x18] sm:$0xff]  ;;  %s1700_s28 = smov 88  }
  0x57   : > { %v518_v5 = vld [vmem:[%s455_s29] sm:$0xff]  ;;  %598 = vadd.xlane.f32.xlu0 %v597_v3  ;;  %v539_v7 = vld [vmem:[%s2153_s2] sm:$0xff]  ;;  %656 = vmatpush.msra.mxu2 %v636_v38  ;;  %v634_v43 = vld [vmem:[%s2155_s4 + $0x8] sm:$0xff]  ;;  %s1701_s27 = smov 80   ;;  %s1702_s19 = smov 112   ;;  %vm667_vm9 = vcmask 64512  }
  0x58   : > { %v1308_v6 = vmul.f32 -1.442695, %v518_v5  ;;  %570 = vmatpush.msra.mxu1 %v543_v2  ;;  %v1958_v33 = vld [vmem:[#allocation7] sm:$0x3]  ;;  %v635_v39 = vld [vmem:[%s2155_s4 + $0x10] sm:$0xff]  ;;  %s1703_s3 = smov 120  }
  0x59   : > { %v549_v34 = vperm.slane %v1958_v33, 0  ;;  %657 = vmatpush.msra.mxu2 %v635_v39  ;;  %v633_v44 = vld [vmem:[%s2155_s4] sm:$0xff]  ;;  %s1704_s6 = smov 72   ;;  %s1705_s17 = smov 104  }
  0x5a   : > { %1435 = vpow2.f32 %v1308_v6  ;;  %571 = vmatpush.msra.mxu1 %v541_v4  ;;  %v1431_v56 = vld [vmem:[%s2156_s5] ss:$0 sm:$0xff]  ;;  %s1706_s26 = smov 56   ;;  %s1707_s29 = smov 40  }
  0x5b   : > { %658 = vmatpush.msra.mxu2 %v634_v43  ;;  %s1708_s16 = smov 64   ;;  %s1328_s18 = sshll.u32 %s1800_s25, 3 }
  0x5c   : > { %572 = vmatpush.msra.mxu1 %v539_v7 }
  0x5d   : > { %659 = vmatpush.msra.mxu2 %v633_v44 }
  0x60   : > { %v1436_v8 = vpop.eup %1435 }
  0x61   : > { %v522_v9 = vadd.f32 1.0, %v1436_v8 }
  0x63   : > { %1437 = vrcp.f32 %v522_v9  ;;  %v534_v12 = vand.u32 2147483648, %v522_v9  ;;  %vm528_vm1 = vweird.f32 %v522_v9  ;;  %v532_v14 = vand.u32 2147483647, %v522_v9 }
  0x64   : > { %1439 = vrcp.f32 %v1698_v21 }
  0x65   : > { %v535_v16 = vor.u32 1.1754944e-38, %v534_v12  ;;  %vm533_vm4 = vcmp.eq.f32.partialorder %v532_v14, 8.507059e+37 }
  0x69   : > { %v1438_v10 = vpop.eup %1437 }
  0x6a   : > { %v524_v11 = vmul.f32 %v1438_v10, %v522_v9  ;;  %vm529_vm2 = vweird.f32 %v1438_v10  ;;  %v1440_v22 = vpop.eup %1439 }
  0x6b   : > { %vm530_vm3 = vmor %vm528_vm1, %vm529_vm2  ;;  %v601_v23 = vmul.f32 32.0, %v1440_v22  ;;  %vm605_vm5 = vweird.f32 %v1440_v22 }
  0x6c   : > { %v525_v13 = vsub.f32 1.0, %v524_v11 }
  0x6d   : > { %v602_v24 = vsub.f32 1.0, %v601_v23 }
  0x6e   : > { %v526_v15 = vmul.f32 %v1438_v10, %v525_v13 }
  0x6f   : > { %v603_v25 = vmul.f32 %v1440_v22, %v602_v24 }
  0x70   : > { %v527_v17 = vadd.f32 %v1438_v10, %v526_v15  ;;  %v546_v15 = vld [vmem:[%s2153_s2 + $0x38] sm:$0xff] }
  0x71   : > { %v604_v26 = vadd.f32 %v1440_v22, %v603_v25  ;;  %589 = vmatpush.msrb.mxu1 %v546_v15 }
  0x72   : > { %v531_v18 = vsel %vm530_vm3, %v1438_v10, %v527_v17  ;;  %v542_v17 = vld [vmem:[%s2153_s2 + $0x18] sm:$0xff] }
  0x73   : > { %v536_v19 = vsel %vm533_vm4, %v535_v16, %v531_v18  ;;  %v1953_v27 = vsel %vm605_vm5, %v1440_v22, %v604_v26  ;;  %v544_v16 = vld [vmem:[%s2153_s2 + $0x28] sm:$0xff] }
  0x74   : > { %v1949_v20 = vmul.f32 %v536_v19, %v518_v5  ;;  %590 = vmatpush.msrb.mxu1 %v544_v16  ;;  %v540_v18 = vld [vmem:[%s2153_s2 + $0x8] sm:$0xff] }
  0x76   : > { %1309 = vmatmul.msk.f32.vlgmr.msra.gmra.mxu1 %vm553_vm0, %v1949_v20 }
  0x77   : > { %591 = vmatpush.msrb.mxu1 %v542_v17 }
  0x79   : > { %592 = vmatpush.msrb.mxu1 %v540_v18 }
  0x7e   : > { %1310 = vmatmul.msk.f32.vlgmr.msrb.gmra.mxu1 %vm553_vm0, %v1949_v20 }
  0xca   : > { %v599_v28 = vpop.xlane.xlu0 %598 }
  0xcb   : > { %v607_v29 = vmul.f32 %v1953_v27, %v599_v28 }
  0xcd   : > { %v608_v30 = vsub.f32 %v1933_v0, %v607_v29 }
  0xcf   : > { %v609_v31 = vmul.f32 %v608_v30, %v608_v30 }
  0xd1   : > { %v610_v32 = vsel %vm553_vm0, %v609_v31, 0.0 }
  0xd2   : > { %611 = vadd.xlane.f32.xlu0 %v610_v32 }
  0xf3   : > { %v574_v35 = vpop.f32.mrf.mxu1 }
  0xf4   : > { %v1961_v36 = vadd.f32 %v574_v35, %v549_v34 }
  0xf6   : > { %v626_v37 = vadd.f32 1.0, %v1961_v36 }
  0xf8   : > { %628 = vrot.lane.b32.xlu1 %v626_v37, %s1699_s12 }
 0x145   : > { %v612_v40 = vpop.xlane.xlu0 %611 }
 0x146   : > { %v613_v41 = vmul.f32 %v612_v40, %v1953_v27 }
 0x148   : > { %v614_v42 = vadd.f32 1e-06, %v613_v41 }
 0x14a   : > { %1441 = vrsqrt.f32 %v614_v42  ;;  %vm621_vm6 = vweird.f32 %v614_v42 }
 0x150   : > { %v1442_v45 = vpop.eup %1441 }
 0x151   : > { %v616_v46 = vmul.f32 %v1442_v45, %v614_v42  ;;  %vm622_vm7 = vweird.f32 %v1442_v45 }
 0x152   : > { %vm623_vm8 = vmor %vm621_vm6, %vm622_vm7 }
 0x153   : > { %v617_v47 = vmul.f32 %v1442_v45, %v616_v46 }
 0x155   : > { %v618_v48 = vmul.f32 0.5, %v617_v47 }
 0x157   : > { %v619_v49 = vsub.f32 1.5, %v618_v48 }
 0x159   : > { %v620_v50 = vmul.f32 %v1442_v45, %v619_v49 }
 0x15b   : > { %v624_v51 = vsel %vm623_vm8, %v1442_v45, %v620_v50 }
 0x15c   : > { %v625_v52 = vmul.f32 %v624_v51, %v608_v30 }
 0x16a   : > { %v629_v53 = vpop.permute.xlu1 %628 }
 0x16b   : > { %v631_v54 = vmul.f32 %v629_v53, %v625_v52 }
 0x16d   : > { %v632_v55 = vadd.f32 %v631_v54, %v1961_v36 }
 0x16f   : > { %1311 = vmatmul.msk.f32.vlgmr.msra.gmra.mxu2 %vm553_vm0, %v632_v55 }
 0x1f2   : > { %v661_v57 = vpop.f32.mrf.mxu2 }
 0x1f3   : > { %v1983_v58 = vadd.f32 %v1431_v56, %v661_v57 }
 0x1f5   : > { %745 = vrot.lane.b32.xlu0 %v1983_v58, %s1700_s28  ;;  %824 = vrot.lane.b32.xlu2 %v1983_v58, %s1701_s27  ;;  %s1709_s28 = smov 48   ;;  %s1710_s27 = smov 8  }
 0x1f6   : > { %665 = vrot.lane.b32.xlu1 %v1983_v58, %s1699_s12 }
 0x1fd   : > { %822 = vrot.lane.b32.xlu2 %v1983_v58, %s1702_s19  ;;  %s1711_s19 = smov 24  }
 0x1fe   : > { %743 = vrot.lane.b32.xlu1 %v1983_v58, %s1703_s3  ;;  %s1712_s3 = smov 16  }
 0x205   : > { %903 = vrot.lane.b32.xlu2 %v1983_v58, %s1704_s6 }
 0x206   : > { %901 = vrot.lane.b32.xlu1 %v1983_v58, %s1705_s17 }
 0x24f   : > { %v825_v59 = vpop.permute.xlu2 %824 }
 0x250   : > { %1318 = vmatpush.xpose.msk.msrb.mxu2 %vm667_vm9, %v825_v59 }
 0x257   : > { %v823_v60 = vpop.permute.xlu2 %822 }
 0x258   : > { %1319 = vmatmul.msk.f32.vlgmr.msrb.gmra.mxu2 %vm667_vm9, %v823_v60 }
 0x25f   : > { %v904_v62 = vpop.permute.xlu2 %903 }
 0x267   : > { %v746_v61 = vpop.permute.xlu0 %745 }
 0x268   : > { %v666_v63 = vpop.permute.xlu1 %665  ;;  %1315 = vmatpush.xpose.msk.msra.mxu0 %vm667_vm9, %v746_v61 }
 0x269   : > { %1312 = vmatpush.xpose.msk.msra.mxu3 %vm667_vm9, %v666_v63 }
 0x26c   : > { %1321 = vmatpush.xpose.msk.msrb.mxu0 %vm667_vm9, %v904_v62  ;;  %1313 = vmatmul.msk.f32.vlgmr.msra.gmra.mxu3 %vm667_vm9, %v1983_v58 }
 0x270   : > { %v744_v1 = vpop.permute.xlu1 %743 }
 0x271   : > { %1316 = vmatmul.msk.f32.vlgmr.msra.gmra.mxu0 %vm667_vm9, %v744_v1 }
 0x278   : > { %v902_v2 = vpop.permute.xlu1 %901 }
 0x279   : > { %1322 = vmatmul.msk.f32.vlgmr.msrb.gmra.mxu0 %vm667_vm9, %v902_v2 }
 0x2db   : > { %v847_v3 = vpop.f32.mrf.mxu2 }
 0x2dc   : > { %v850_v4 = vmul.f32 0.35355338, %v847_v3 }
 0x2de   : > { %v851_v5 = vsel %vm667_vm9, %v850_v4, -inf }
 0x2df   : > { %852 = vmax.xlane.f32.xlu0 %v851_v5 }
 0x2ee   : > { %v768_v6 = vpop.f32.mrf.mxu0 }
 0x2ef   : > { %v771_v7 = vmul.f32 0.35355338, %v768_v6  ;;  %v689_v8 = vpop.f32.mrf.mxu3 }
 0x2f0   : > { %v692_v9 = vmul.f32 0.35355338, %v689_v8 }
 0x2f1   : > { %v772_v10 = vsel %vm667_vm9, %v771_v7, -inf }
 0x2f2   : > { %773 = vmax.xlane.f32.xlu1 %v772_v10  ;;  %v693_v11 = vsel %vm667_vm9, %v692_v9, -inf }
 0x2f3   : > { %694 = vmax.xlane.f32.xlu2 %v693_v11  ;;  %796 = vrot.lane.b32.xlu0 %v1983_v58, %s1706_s26  ;;  %s1713_s26 = smov 32  }
 0x2f6   : > { %v926_v12 = vpop.f32.mrf.mxu0 }
 0x2f7   : > { %v929_v13 = vmul.f32 0.35355338, %v926_v12 }
 0x2f9   : > { %v930_v14 = vsel %vm667_vm9, %v929_v13, -inf }
 0x2fb   : > { %931 = vmax.xlane.f32.xlu2 %v930_v14 }
 0x352   : > { %v853_v19 = vpop.xlane.xlu0 %852 }
 0x353   : > { %v854_v21 = vsub.f32 %v850_v4, %v853_v19 }
 0x355   : > { %v855_v22 = vmul.f32 1.442695, %v854_v21 }
 0x357   : > { %1443 = vpow2.f32 %v855_v22 }
 0x35d   : > { %v2021_v23 = vpop.eup %1443 }
 0x35e   : > { %v857_v24 = vsel %vm667_vm9, %v2021_v23, 0.0 }
 0x35f   : > { %858 = vadd.xlane.f32.xlu0 %v857_v24 }
 0x365   : > { %v774_v25 = vpop.xlane.xlu1 %773  ;;  %v797_v26 = vpop.permute.xlu0 %796 }
 0x366   : > { %v775_v28 = vsub.f32 %v771_v7, %v774_v25  ;;  %v695_v29 = vpop.xlane.xlu2 %694  ;;  %817 = vmatpush.msra.mxu1 %v797_v26 }
 0x367   : > { %v696_v30 = vsub.f32 %v692_v9, %v695_v29 }
 0x368   : > { %v776_v31 = vmul.f32 1.442695, %v775_v28 }
 0x369   : > { %v697_v32 = vmul.f32 1.442695, %v696_v30 }
 0x36a   : > { %1445 = vpow2.f32 %v776_v31 }
 0x36b   : > { %1447 = vpow2.f32 %v697_v32 }
 0x36e   : > { %v932_v20 = vpop.xlane.xlu2 %931 }
 0x36f   : > { %v933_v34 = vsub.f32 %v929_v13, %v932_v20 }
 0x370   : > { %v1446_v35 = vpop.eup %1445 }
 0x371   : > { %v2025_v37 = vpop.eup %1447  ;;  %v934_v38 = vmul.f32 1.442695, %v933_v34  ;;  %v778_v39 = vsel %vm667_vm9, %v1446_v35, 0.0  ;;  %v2059_v34 = vpop.f32.mrf.mxu1 }
 0x372   : > { %779 = vadd.xlane.f32.xlu1 %v778_v39  ;;  %v699_v40 = vsel %vm667_vm9, %v2025_v37, 0.0 }
 0x373   : > { %1449 = vpow2.f32 %v934_v38  ;;  %700 = vadd.xlane.f32.xlu2 %v699_v40  ;;  %954 = vrot.lane.b32.xlu0 %v1983_v58, %s1707_s29  ;;  %v1000_v40 = vld [vmem:[#allocation8 + $0x18] sm:$0xff]  ;;  %s2194_s29 = sld [smem:[#allocation27_spill]] }
 0x374   : > { %1020 = vmatpush.msra.mxu2 %v1000_v40  ;;  %v1434_v40 = vld [vmem:[%s2162_s11] ss:$0 sm:$0xff] }
 0x379   : > { %v2031_v41 = vpop.eup %1449 }
 0x37a   : > { %v936_v42 = vsel %vm667_vm9, %v2031_v41, 0.0 }
 0x37b   : > { %937 = vadd.xlane.f32.xlu2 %v936_v42  ;;  %v998_v42 = vld [vmem:[#allocation8 + $0x8] sm:$0xff] }
 0x38b   : > { %717 = vrot.lane.b32.xlu1 %v1983_v58, %s1708_s16 }
 0x393   : > { %875 = vrot.lane.b32.xlu2 %v1983_v58, %s1709_s28  ;;  %s516_s28 = scalar_lea.vmem [#allocation11], %s1911_s13  ;;  %s1633_s13 = scalar_lea.hbm %s2194_s29, 16 }
 0x3d2   : > { %v2038_v43 = vpop.xlane.xlu0 %858 }
 0x3d3   : > { %1451 = vrcp.f32 %v2038_v43  ;;  %v871_v17 = vand.u32 2147483648, %v2038_v43  ;;  %vm865_vm6 = vweird.f32 %v2038_v43  ;;  %v869_v19 = vand.u32 2147483647, %v2038_v43 }
 0x3d5   : > { %v872_v30 = vor.u32 1.1754944e-38, %v871_v17  ;;  %v1113_v17 = vld [vmem:[%s2161_s10 + $0x30] sm:$0xff] }
 0x3d9   : > { %v2041_v47 = vpop.eup %1451 }
 0x3da   : > { %v861_v53 = vmul.f32 %v2041_v47, %v2038_v43  ;;  %vm866_vm4 = vweird.f32 %v2041_v47 }
 0x3db   : > { %vm867_vm8 = vmor %vm865_vm6, %vm866_vm4 }
 0x3dc   : > { %v862_v60 = vsub.f32 1.0, %v861_v53 }
 0x3de   : > { %v863_v7 = vmul.f32 %v2041_v47, %v862_v60 }
 0x3e0   : > { %v864_v16 = vadd.f32 %v2041_v47, %v863_v7  ;;  %v550_v7 = vperm.slane %v1958_v33, 1  ;;  %v1114_v33 = vld [vmem:[%s2161_s10 + $0x38] sm:$0xff] }
 0x3e1   : > { %1131 = vmatpush.msra.mxu0 %v1114_v33 }
 0x3e2   : > { %v868_v26 = vsel %vm867_vm8, %v2041_v47, %v864_v16 }
 0x3e3   : > { %1132 = vmatpush.msra.mxu0 %v1113_v17 }
 0x3e5   : > { %v780_v44 = vpop.xlane.xlu1 %779  ;;  %v955_v45 = vpop.permute.xlu0 %954 }
 0x3e6   : > { %1453 = vrcp.f32 %v780_v44  ;;  %v701_v46 = vpop.xlane.xlu2 %700  ;;  %975 = vmatpush.msrb.mxu1 %v955_v45  ;;  %v792_v55 = vand.u32 2147483648, %v780_v44  ;;  %v790_v58 = vand.u32 2147483647, %v780_v44  ;;  %vm786_vm11 = vweird.f32 %v780_v44 }
 0x3e7   : > { %1455 = vrcp.f32 %v701_v46  ;;  %v713_v1 = vand.u32 2147483648, %v701_v46  ;;  %vm707_vm15 = vweird.f32 %v701_v46  ;;  %v711_v4 = vand.u32 2147483647, %v701_v46 }
 0x3e8   : > { %v793_v62 = vor.u32 1.1754944e-38, %v792_v55  ;;  %vm791_vm14 = vcmp.eq.f32.partialorder %v790_v58, 8.507059e+37 }
 0x3e9   : > { %v714_v10 = vor.u32 1.1754944e-38, %v713_v1  ;;  %vm712_vm2 = vcmp.eq.f32.partialorder %v711_v4, 8.507059e+37 }
 0x3ec   : > { %v1454_v48 = vpop.eup %1453 }
 0x3ed   : > { %v1456_v49 = vpop.eup %1455  ;;  %v782_v50 = vmul.f32 %v1454_v48, %v780_v44  ;;  %vm787_vm10 = vweird.f32 %v1454_v48 }
 0x3ee   : > { %v703_v51 = vmul.f32 %v1456_v49, %v701_v46  ;;  %v938_v52 = vpop.xlane.xlu2 %937  ;;  %vm708_vm12 = vweird.f32 %v1456_v49  ;;  %vm788_vm13 = vmor %vm786_vm11, %vm787_vm10  ;;  %vm870_vm11 = vcmp.eq.f32.partialorder %v869_v19, 8.507059e+37  ;;  %v1111_v19 = vld [vmem:[%s2161_s10 + $0x20] sm:$0xff] }
 0x3ef   : > { %v783_v54 = vsub.f32 1.0, %v782_v50  ;;  %1457 = vrcp.f32 %v938_v52  ;;  %vm709_vm1 = vmor %vm707_vm15, %vm708_vm12  ;;  %v950_v12 = vand.u32 2147483648, %v938_v52  ;;  %v948_v14 = vand.u32 2147483647, %v938_v52 }
 0x3f0   : > { %v704_v56 = vsub.f32 1.0, %v703_v51  ;;  %vm944_vm5 = vweird.f32 %v938_v52  ;;  %v873_v32 = vsel %vm870_vm11, %v872_v30, %v868_v26  ;;  %vm993_vm12 = vcmask 130048   ;;  %v1433_v26 = vld [vmem:[%s2160_s9] ss:$0 sm:$0xff] }
 0x3f1   : > { %v784_v57 = vmul.f32 %v1454_v48, %v783_v54  ;;  %v951_v21 = vor.u32 1.1754944e-38, %v950_v12  ;;  %vm949_vm10 = vcmp.eq.f32.partialorder %v948_v14, 8.507059e+37  ;;  %v874_v20 = vmul.f32 %v2021_v23, %v873_v32  ;;  %v997_v23 = vld [vmem:[#allocation8] sm:$0xff] }
 0x3f2   : > { %v705_v59 = vmul.f32 %v1456_v49, %v704_v56 }
 0x3f3   : > { %v785_v61 = vadd.f32 %v1454_v48, %v784_v57 }
 0x3f4   : > { %v706_v63 = vadd.f32 %v1456_v49, %v705_v59 }
 0x3f5   : > { %v1458_v2 = vpop.eup %1457  ;;  %v789_v3 = vsel %vm788_vm13, %v1454_v48, %v785_v61  ;;  %vm995_vm13 = vcmask 195584  }
 0x3f6   : > { %v794_v5 = vsel %vm791_vm14, %v793_v62, %v789_v3  ;;  %v940_v6 = vmul.f32 %v1458_v2, %v938_v52  ;;  %v710_v9 = vsel %vm709_vm1, %v1456_v49, %v706_v63  ;;  %vm945_vm3 = vweird.f32 %v1458_v2  ;;  %v876_v29 = vpop.permute.xlu2 %875  ;;  %v1432_v49 = vld [vmem:[%s2158_s7] ss:$0 sm:$0xff]  ;;  %v1068_v63 = vld [vmem:[#allocation10 + $0x8] sm:$0xff] }
 0x3f7   : > { %v795_v8 = vmul.f32 %v1446_v35, %v794_v5  ;;  %v715_v15 = vsel %vm712_vm2, %v714_v10, %v710_v9  ;;  %vm946_vm7 = vmor %vm944_vm5, %vm945_vm3  ;;  %v1070_v62 = vld [vmem:[#allocation10 + $0x18] sm:$0xff]  ;;  %v595_v10 = vadd.f32 %v2059_v34, %v550_v7  ;;  %vm1119_vm1 = vcmask 523264  }
 0x3f8   : > { %v941_v11 = vsub.f32 1.0, %v940_v6  ;;  %v716_v24 = vmul.f32 %v2025_v37, %v715_v15 }
 0x3f9   : > { %1317 = vmatmul.msk.f32.vlgmr.msra.gmra.mxu1 %vm667_vm9, %v795_v8 }
 0x3fa   : > { %v942_v13 = vmul.f32 %v1458_v2, %v941_v11 }
 0x3fc   : > { %v943_v18 = vadd.f32 %v1458_v2, %v942_v13  ;;  %v1060_v13 = vadd.f32 1.0, %v595_v10 }
 0x3fd   : > { %v718_v22 = vpop.permute.xlu1 %717 }
 0x3fe   : > { %v947_v25 = vsel %vm946_vm7, %v1458_v2, %v943_v18  ;;  %738 = vmatpush.msrb.mxu3 %v718_v22  ;;  %v1112_v18 = vld [vmem:[%s2161_s10 + $0x28] sm:$0xff]  ;;  %v1109_v22 = vld [vmem:[%s2161_s10 + $0x10] sm:$0xff] }
 0x3ff   : > { %v952_v28 = vsel %vm949_vm10, %v951_v21, %v947_v25  ;;  %1314 = vmatmul.msk.f32.vlgmr.msrb.gmra.mxu3 %vm667_vm9, %v716_v24  ;;  %1133 = vmatpush.msra.mxu0 %v1112_v18  ;;  %v1110_v21 = vld [vmem:[%s2161_s10 + $0x18] sm:$0xff]  ;;  %v1108_v24 = vld [vmem:[%s2161_s10 + $0x8] sm:$0xff]  ;;  %v1107_v25 = vld [vmem:[%s2161_s10] sm:$0xff] }
 0x400   : > { %896 = vmatpush.msra.mxu3 %v876_v29  ;;  %v953_v31 = vmul.f32 %v2031_v41, %v952_v28  ;;  %v999_v41 = vld [vmem:[#allocation8 + $0x10] sm:$0xff] }
 0x401   : > { %1021 = vmatpush.msra.mxu2 %v999_v41  ;;  %1134 = vmatpush.msra.mxu0 %v1111_v19 }
 0x402   : > { %1323 = vmatmul.msk.f32.vlgmr.msrb.gmra.mxu1 %vm667_vm9, %v953_v31  ;;  %1090 = vmatpush.msrb.mxu3 %v1070_v62 }
 0x403   : > { %1022 = vmatpush.msra.mxu2 %v998_v42  ;;  %1135 = vmatpush.msra.mxu0 %v1110_v21 }
 0x405   : > { %1023 = vmatpush.msra.mxu2 %v997_v23  ;;  %1136 = vmatpush.msra.mxu0 %v1109_v22 }
 0x407   : > { %1320 = vmatmul.msk.f32.vlgmr.msra.gmra.mxu3 %vm667_vm9, %v874_v20  ;;  %1137 = vmatpush.msra.mxu0 %v1108_v24 }
 0x409   : > { %1138 = vmatpush.msra.mxu0 %v1107_v25 }
 0x476   : > { %v819_v35 = vpop.f32.mrf.mxu1 }
 0x477   : > { %981 = vrot.lane.b32.xlu1 %v819_v35, %s1710_s27  ;;  %s1167_s27 = sshll.u32 %s516_s28, 4  ;;  %s1168_s27 = int_to_ptr.vmem [resolvable:$true] %s1167_s27 }
 0x47f   : > { %v977_v37 = vpop.f32.mrf.mxu1 }
 0x480   : > { %989 = vrot.lane.b32.xlu0 %v977_v37, %s1711_s19 }
 0x482   : > { %v740_v38 = vpop.f32.mrf.mxu3 }
 0x48a   : > { %v898_v39 = vpop.f32.mrf.mxu3 }
 0x48b   : > { %985 = vrot.lane.b32.xlu2 %v898_v39, %s1712_s3 }
 0x4e5   : > { %v986_v45 = vpop.permute.xlu2 %985 }
 0x4e9   : > { %v982_v43 = vpop.permute.xlu1 %981 }
 0x4ea   : > { %v992_v44 = vsel %vm667_vm9, %v740_v38, %v982_v43 }
 0x4eb   : > { %v994_v47 = vsel %vm993_vm12, %v992_v44, %v986_v45 }
 0x4f2   : > { %v990_v46 = vpop.permute.xlu0 %989 }
 0x4f3   : > { %v996_v48 = vsel %vm995_vm13, %v994_v47, %v990_v46 }
 0x4f4   : > { %1324 = vmatmul.msk.f32.vlgmr.msra.gmra.mxu2 %vm553_vm0, %v996_v48 }
 0x577   : > { %v1025_v50 = vpop.f32.mrf.mxu2 }
 0x578   : > { %v1026_v51 = vadd.f32 %v1432_v49, %v1025_v50 }
 0x57a   : > { %1029 = vrot.lane.b32.xlu1 %v1026_v51, %s1708_s16 }
 0x5ec   : > { %v1030_v52 = vpop.permute.xlu1 %1029 }
 0x5ed   : > { %v1032_v53 = vmul.f32 %v1030_v52, %v1961_v36 }
 0x5ef   : > { %1034 = vrot.lane.b32.xlu2 %v1032_v53, %s1708_s16  ;;  %s1165_s16 = scalar_lea.hbm %s2194_s29, %s1328_s18 }
 0x5f0   : > { %s1169_s19 = sshll.u32 %s1165_s16, 4  ;;  %s1170_s19 = int_to_ptr.hbm [resolvable:$true] %s1169_s19 }
 0x5f1   : > { %s1627_s3 = sshra.s32 %s1170_s19, 4  ;;  %s1628_s3 = int_to_ptr.hbm [resolvable:$true] %s1627_s3 }
 0x5f2   : > { %p1634_p10 = scmp.lt.s32.totalorder %s1628_s3, %s2194_s29 }
 0x5f7   : > { %1063 = vrot.lane.b32.xlu2 %v1961_v36, %s1713_s26  ;;  %v1069_v36 = vld [vmem:[#allocation10 + $0x10] sm:$0xff] }
 0x5f8   : > { %1091 = vmatpush.msrb.mxu3 %v1069_v36 }
 0x5fa   : > { %1092 = vmatpush.msrb.mxu3 %v1068_v63 }
 0x649   : > { %v1035_v54 = vpop.permute.xlu2 %1034 }
 0x64a   : > { %v2072_v55 = vadd.f32 %v1035_v54, %v1933_v0  ;;  %v1067_v0 = vld [vmem:[#allocation10] sm:$0xff] }
 0x64b   : > { %1093 = vmatpush.msrb.mxu3 %v1067_v0 }
 0x64c   : > { %v1038_v56 = vsel %vm553_vm0, %v2072_v55, 0.0 }
 0x64d   : > { %1039 = vadd.xlane.f32.xlu0 %v1038_v56 }
 0x6c0   : > { %v1040_v57 = vpop.xlane.xlu0 %1039 }
 0x6c1   : > { %v1041_v58 = vmul.f32 %v1040_v57, %v1953_v27 }
 0x6c3   : > { %v1042_v59 = vsub.f32 %v2072_v55, %v1041_v58 }
 0x6c5   : > { %v1043_v60 = vmul.f32 %v1042_v59, %v1042_v59 }
 0x6c7   : > { %v1044_v61 = vsel %vm553_vm0, %v1043_v60, 0.0 }
 0x6c8   : > { %1045 = vadd.xlane.f32.xlu1 %v1044_v61 }
 0x73b   : > { %v1046_v1 = vpop.xlane.xlu1 %1045 }
 0x73c   : > { %v1047_v2 = vmul.f32 %v1046_v1, %v1953_v27  ;;  %v1064_v27 = vpop.permute.xlu2 %1063 }
 0x73e   : > { %v1048_v3 = vadd.f32 1e-06, %v1047_v2 }
 0x740   : > { %1459 = vrsqrt.f32 %v1048_v3  ;;  %vm1055_vm14 = vweird.f32 %v1048_v3 }
 0x746   : > { %v1460_v4 = vpop.eup %1459 }
 0x747   : > { %v1050_v5 = vmul.f32 %v1460_v4, %v1048_v3  ;;  %vm1056_vm9 = vweird.f32 %v1460_v4 }
 0x748   : > { %vm1057_vm15 = vmor %vm1055_vm14, %vm1056_vm9 }
 0x749   : > { %v1051_v6 = vmul.f32 %v1460_v4, %v1050_v5 }
 0x74b   : > { %v1052_v8 = vmul.f32 0.5, %v1051_v6 }
 0x74d   : > { %v1053_v9 = vsub.f32 1.5, %v1052_v8 }
 0x74f   : > { %v1054_v11 = vmul.f32 %v1460_v4, %v1053_v9 }
 0x751   : > { %v1058_v12 = vsel %vm1057_vm15, %v1460_v4, %v1054_v11 }
 0x752   : > { %v1059_v14 = vmul.f32 %v1058_v12, %v1042_v59 }
 0x754   : > { %v1061_v15 = vmul.f32 %v1060_v13, %v1059_v14 }
 0x756   : > { %v1066_v16 = vadd.f32 %v1064_v27, %v1061_v15 }
 0x758   : > { %1325 = vmatmul.msk.f32.vlgmr.msrb.gmra.mxu3 %vm553_vm0, %v1066_v16 }
 0x7db   : > { %v1095_v28 = vpop.f32.mrf.mxu3 }
 0x7dc   : > { %v1096_v29 = vadd.f32 %v1433_v26, %v1095_v28 }
 0x7de   : > { %v1098_v30 = vmul.f32 %v1096_v29, %v1096_v29 }
 0x7e0   : > { %v1099_v31 = vmul.f32 %v1098_v30, %v1096_v29 }
 0x7e2   : > { %v1100_v32 = vmul.f32 0.044715, %v1099_v31 }
 0x7e4   : > { %v1101_v20 = vadd.f32 %v1100_v32, %v1096_v29 }
 0x7e6   : > { %v1102_v34 = vmul.f32 0.7978846, %v1101_v20 }
 0x7e8   : > { %1461 = vtanh.f32 %v1102_v34 }
 0x7ee   : > { %v1462_v35 = vpop.eup %1461 }
 0x7ef   : > { %v1104_v37 = vadd.f32 1.0, %v1462_v35 }
 0x7f1   : > { %v1105_v38 = vmul.f32 0.5, %v1104_v37 }
 0x7f3   : > { %v1106_v39 = vmul.f32 %v1105_v38, %v1096_v29 }
 0x7f5   : > { %1326 = vmatmul.msk.f32.vlgmr.msra.gmra.mxu0 %vm1119_vm1, %v1106_v39 }
 0x872   : > { %v1140_v41 = vpop.f32.mrf.mxu0 }
 0x873   : > { %v1141_v42 = vadd.f32 %v1434_v40, %v1140_v41 }
 0x875   : > { %1144 = vrot.lane.b32.xlu2 %v1141_v42, %s1713_s26  ;;  %s1155_s26 = scalar_lea.sflag [#allocation4], %s1908_s23 }
 0x8cf   : > { %v1145_v23 = vpop.permute.xlu2 %1144 }
 0x8d0   : > { %v1147_v43 = vmul.f32 %v1145_v23, %v595_v10 }
 0x8d2   : > { %1149 = vrot.lane.b32.xlu2 %v1147_v43, %s1699_s12  ;;  %s1629_s12 = scalar_lea.hbm %s1628_s3, 8 }
 0x8d3   : > { %p1630_p1 = scmp.ne.s32.totalorder %s1628_s3, %s1629_s12  ;;  %p1635_p11 = scmp.lt.s32.totalorder %s1633_s13, %s1629_s12 }
 0x8d5   : > { %p1631_p4 = pnand %p1630_p1, %p1862_p7  ;;  %p1636_p2 = por %p1635_p11, %p1634_p10 }
 0x8d7   : > { %p1632_p8 = pneg %p1631_p4 }
 0x8d9   : > { %p1637_p12 = pnand %p1636_p2, %p1632_p8 }
 0x92c   : > { %v1150_v44 = vpop.permute.xlu2 %1149 }
 0x92d   : > { %v1152_v45 = vadd.f32 %v1150_v44, %v2072_v55 }
 0x92f   : > { %1153 = vst.msk [vmem:[%s516_s28] sm:$0xff] %vm553_vm0, %v1152_v45 }
 0x930   : > { %1640 = shalt.err (!%p1637_p12)
}
 0x931   : > { %1347 = dma.vmem_to_hbm [thread:$0]  (%p1862_p7), %s1168_s27, 128, %s1170_s19, %s1155_s26  }
 0x932 PF: > { %s2195_s23 = sld [smem:[#allocation17_spill]] }
 0x933   : > { %s2197_s8 = sld [smem:[#allocation19_spill]] }
 0x938   : > { %s1181_s21 = sand.u32 1, %s2195_s23  }
 0x939   : > { %p2198_p0 = scmp.ge.s32.totalorder %s2197_s8, 2  ;;  %s1182_s18 = scalar_lea.sflag [#allocation4], %s1181_s21 }
 0x93b   : > { %p1367_p9 = pnand %p2198_p0, %p1814_p6 }
 0x93d   : > { %p1368_p13 = pneg %p1367_p9 }
 0x93f   : > { %1674 = dma.done.wait (%p1368_p13), %s1182_s18, 128  }
 0x940   : > { %1676 = vsyncadd (%p1368_p13), %s1182_s18, 4294967168  ;;  %s2199_s24 = sld [smem:[#allocation21_spill]]  ;;  %s2202_s21 = smov %s1683_s22 }
 0x941   : > { %s2200_s14 = sld [smem:[#allocation18_spill]] }
 0x942   : > { %s2201_s23 = sld [smem:[#allocation22_spill]] }
 0x946   : > { %p29_p3 = scmp.ge.s32.totalorder %s2199_s24, 4  }
 0x947   : > { %s2203_s22 = smov %s2200_s14 }
 0x948   :  { %31 = sbr.rel (!%p29_p3) target bundleno = 13 (0xd), region = 138 }
 0x94d   :  { %1188 = vsyncpa [#allocation3], 1 }
 0x94e   :  { %1190 = vsyncpa [#allocation3 + $0x1], 1 }
 0x94f   :  { %1191 = vsyncpa [#allocation6], 1 }
 0x950   :  { %1193 = vsyncpa [#allocation6 + $0x1], 1 }
 0x951   :  { %1194 = vsyncpa [#allocation9], 1 }
 0x952   :  { %1195 = vsyncpa [#allocation4], 1 }
 0x953   :  { %1197 = vsyncpa [#allocation4 + $0x1], 1 }

// kernel: tpu_custom_call.1
= control target key start
LH: loop header
LB: loop body
LE: loop exit
PB: predicated region body
PF: predicated region fallthrough
CT: control target
= control target key end

     0   :  { %s2151_s0 = inlined_call_operand.hbm [shape: f32[2,8,32], index: 0, kind: input, shape index: {}]   ;;  %s2152_s1 = inlined_call_operand.hbm [shape: f32[2,8,32], index: 1, kind: input, shape index: {}]   ;;  %s2153_s2 = inlined_call_operand.vmem [shape: f32[32,192], index: 2, kind: input, shape index: {}]   ;;  %s2154_s3 = inlined_call_operand.hbm [shape: f32[1,192], index: 3, kind: input, shape index: {}]   ;;  %s2155_s4 = inlined_call_operand.vmem [shape: f32[32,96], index: 4, kind: input, shape index: {}]   ;;  %s2156_s5 = inlined_call_operand.vmem [shape: f32[1,96], index: 5, kind: input, shape index: {}]   ;;  %s2157_s6 = inlined_call_operand.hbm [shape: f32[32,32], index: 6, kind: input, shape index: {}]   ;;  %s2158_s7 = inlined_call_operand.vmem [shape: f32[1,32], index: 7, kind: input, shape index: {}]   ;;  %s2159_s8 = inlined_call_operand.hbm [shape: f32[32,64], index: 8, kind: input, shape index: {}]   ;;  %s2160_s9 = inlined_call_operand.vmem [shape: f32[1,64], index: 9, kind: input, shape index: {}]   ;;  %s2161_s10 = inlined_call_operand.vmem [shape: f32[64,32], index: 10, kind: input, shape index: {}]   ;;  %s2162_s11 = inlined_call_operand.vmem [shape: f32[1,32], index: 11, kind: input, shape index: {}]   ;;  %s2163_s12 = inlined_call_operand.hbm [shape: f32[2,8,32], index: 12, kind: output, shape index: {}]  }
   0x1   :  { %2173 = sst [smem:[#allocation24_spill]] %s2154_s3 }
   0x2   :  { %2174 = sst [smem:[#allocation25_spill]] %s2157_s6 }
   0x3   :  { %2175 = sst [smem:[#allocation26_spill]] %s2159_s8 }
   0x4   :  { %2176 = sst [smem:[#allocation27_spill]] %s2163_s12 }
   0x5   :  { %17 = vsyncpa [#allocation3], 0 }
   0x6   :  { %19 = vsyncpa [#allocation3 + $0x1], 0 }
   0x7   :  { %20 = vsyncpa [#allocation6], 0 }
   0x8   :  { %22 = vsyncpa [#allocation6 + $0x1], 0 }
   0x9   :  { %23 = vsyncpa [#allocation9], 0 }
   0xa   :  { %24 = vsyncpa [#allocation4], 0 }
   0xb   :  { %26 = vsyncpa [#allocation4 + $0x1], 0  ;;  %s1779_s21 = smov 0   ;;  %s1781_s22 = smov 0  }
   0xc   :  { %s1783_s23 = smov 0   ;;  %s1785_s24 = smov 0  }
   0xd LB: > { %2177 = sst [smem:[#allocation17_spill]] %s1679_s21  ;;  %s1800_s25 = sadd.s32 4294967295, %s1691_s24   ;;  %s1691_s24 = sphi %s1785_s24, %s2199_s24   ;;  %s1687_s23 = sphi %s1783_s23, %s2201_s23   ;;  %s1683_s22 = sphi %s1781_s22, %s2203_s22   ;;  %s1679_s21 = sphi %s1779_s21, %s2202_s21  }
   0xe   : > { %2178 = sst [smem:[#allocation18_spill]] %s1687_s23  ;;  %s1291_s26 = sadd.s32 4294967294, %s1691_s24  }
   0xf   : > { %2179 = sst [smem:[#allocation19_spill]] %s1691_s24  ;;  %p52_p0 = scmp.ne.s32.totalorder %s1683_s22, %s1679_s21 }
  0x10   : > { %p53_p1 = scmp.eq.s32.totalorder %s1800_s25, 0  ;;  %p312_p2 = scmp.eq.s32.totalorder %s1800_s25, 1 }
  0x11   : > { %p318_p3 = scmp.eq.s32.totalorder %s1291_s26, 1  ;;  %p1292_p5 = scmp.ge.s32.totalorder %s1691_s24, 1 }
  0x12   : > { %p1809_p4 = por %p53_p1, %p52_p0  ;;  %p325_p7 = scmp.lt.s32.totalorder %s1691_s24, 3 }
  0x13   : > { %p1814_p6 = por %p318_p3, %p52_p0  ;;  %s2183_s3 = sld [smem:[#allocation24_spill]] }
  0x14   : > { %p1822_p8 = pnand %p1292_p5, %p325_p7  ;;  %s1693_s15 = smov [#allocation7]  }
  0x15   : > { %s2181_s28 = scalar_select %p1814_p6, 1, 0 }
  0x16   : > { %p1349_p10 = pneg %p1822_p8  ;;  %s342_s16 = sshll.u32 %s1693_s15, 4  ;;  %s343_s16 = int_to_ptr.vmem [resolvable:$true] %s342_s16 }
  0x17   : > { %2182 = sst [smem:[#allocation20_spill]] %s2181_s28  ;;  %s1694_s26 = smov [#allocation8]  }
  0x18   : > { %s2185_s6 = sld [smem:[#allocation25_spill]]  ;;  %p1834_p11 = pnand %p1349_p10, %p53_p1 }
  0x19   : > { %s340_s13 = sshll.u32 %s2183_s3, 4  ;;  %s359_s29 = sshll.u32 %s1694_s26, 4  ;;  %s341_s13 = int_to_ptr.hbm [resolvable:$true] %s340_s13  ;;  %s360_s29 = int_to_ptr.vmem [resolvable:$true] %s359_s29 }
  0x1a   : > { %1352 = dma.hbm_to_vmem [thread:$0]  (!%p1834_p11), %s341_s13, 32, %s343_s16, [#allocation6]  }
  0x1b   : > { %s1695_s30 = smov 128   ;;  %s1696_s15 = smov 8  }
  0x1c   : > { %s2187_s8 = sld [smem:[#allocation26_spill]]  ;;  %s1697_s26 = smov [#allocation10]  }
  0x1d   : > { %s1848_s13 = sadd.s32 1, %s1691_s24   ;;  %s39_s28 = sadd.s32 1, %s1687_s23 }
  0x1e   : > { %s357_s19 = sshll.u32 %s2185_s6, 4  ;;  %s376_s6 = sshll.u32 %s1697_s26, 4  ;;  %s358_s19 = int_to_ptr.hbm [resolvable:$true] %s357_s19  ;;  %s377_s6 = int_to_ptr.vmem [resolvable:$true] %s376_s6 }
  0x1f   : > { %1355 = dma.hbm_to_vmem [thread:$0]  (!%p1834_p11), %s358_s19, 512, %s360_s29, [#allocation9], %s1695_s30, %s1695_s30, %s1696_s15  }
  0x20   : > { %2188 = sst [smem:[#allocation21_spill]] %s1848_s13  ;;  %s36_s16 = ssub.s32 %s1691_s24, %s1848_s13 }
  0x21   : > { %p37_p12 = scmp.eq.s32.totalorder %s36_s16, 0  ;;  %p46_p13 = scmp.ne.s32.totalorder %s1687_s23, %s1683_s22 }
  0x22   : > { %s374_s3 = sshll.u32 %s2187_s8, 4  ;;  %p47_p0 = scmp.eq.s32.totalorder %s1691_s24, 0  ;;  %s375_s3 = int_to_ptr.hbm [resolvable:$true] %s374_s3 }
  0x23   : > { %1358 = dma.hbm_to_vmem [thread:$0]  (!%p1834_p11), %s375_s3, 512, %s377_s6, [#allocation9], %s1695_s30, %s1695_s30, %s1696_s15  }
  0x24   : > { %p1373_p3 = scmp.lt.s32.totalorder %s1691_s24, 2  ;;  %p48_p5 = por %p47_p0, %p46_p13 }
  0x25   : > { %s1858_s19 = scalar_select %p37_p12, %s1687_s23, %s39_s28  }
  0x26   : > { %p1862_p7 = por %p312_p2, %p46_p13  ;;  %s399_s3 = sand.u32 1, %s1687_s23  }
  0x27   : > { %2189 = sst [smem:[#allocation22_spill]] %s1858_s19  ;;  %s1298_s6 = sshll.u32 %s1691_s24, 3 }
  0x28   : > { %s2190_s29 = scalar_select %p1862_p7, 1, 0 }
  0x29   : > { %s1297_s20 = sshll.u32 %s399_s3, 3  ;;  %s407_s17 = scalar_lea.hbm %s2151_s0, %s1298_s6 }
  0x2a   : > { %2191 = sst [smem:[#allocation23_spill]] %s2190_s29  ;;  %s409_s18 = sshll.u32 %s407_s17, 4  ;;  %s410_s18 = int_to_ptr.hbm [resolvable:$true] %s409_s18 }
  0x2b   : > { %s403_s26 = scalar_lea.vmem [#allocation2], %s1297_s20  ;;  %p1873_p10 = pnand %p1373_p3, %p48_p5 }
  0x2c   : > { %s411_s16 = sshll.u32 %s403_s26, 4  ;;  %s426_s23 = scalar_lea.hbm %s2152_s1, %s1298_s6  ;;  %s412_s16 = int_to_ptr.vmem [resolvable:$true] %s411_s16 }
  0x2d   : > { %s418_s13 = sand.u32 1, %s1691_s24   ;;  %s400_s21 = scalar_lea.sflag [#allocation3], %s399_s3 }
  0x2e   : > { %s1553_s30 = sshra.s32 %s410_s18, 4  ;;  %p1557_p11 = pneg %p1873_p10  ;;  %s1554_s30 = int_to_ptr.hbm [resolvable:$true] %s1553_s30 }
  0x2f   : > { %s1555_s15 = scalar_lea.hbm %s1554_s30, 8  ;;  %s1560_s12 = scalar_lea.hbm %s2151_s0, 16 }
  0x30   : > { %p1556_p2 = scmp.ne.s32.totalorder %s1554_s30, %s1555_s15  ;;  %p1561_p0 = scmp.lt.s32.totalorder %s1554_s30, %s2151_s0 }
  0x31   : > { %p1562_p3 = scmp.lt.s32.totalorder %s1560_s12, %s1555_s15 }
  0x32   : > { %p1558_p12 = pnand %p1557_p11, %p1556_p2 }
  0x33   : > { %p1563_p5 = por %p1562_p3, %p1561_p0 }
  0x34   : > { %p1559_p13 = pneg %p1558_p12 }
  0x36   : > { %p1564_p9 = pnand %p1563_p5, %p1559_p13 }
  0x38   : > { %1567 = shalt.err (!%p1564_p9)
}
  0x39   : > { %1362 = dma.hbm_to_vmem [thread:$0]  (!%p1873_p10), %s410_s18, 128, %s412_s16, %s400_s21  }
  0x3a   : > { %s428_s3 = sshll.u32 %s426_s23, 4  ;;  %s422_s6 = scalar_lea.vmem [#allocation5], %s1297_s20  ;;  %s429_s3 = int_to_ptr.hbm [resolvable:$true] %s428_s3 }
  0x3b   : > { %s430_s24 = sshll.u32 %s422_s6, 4  ;;  %s419_s29 = scalar_lea.sflag [#allocation6], %s418_s13  ;;  %s431_s24 = int_to_ptr.vmem [resolvable:$true] %s430_s24 }
  0x3c   : > { %s1583_s17 = sshra.s32 %s429_s3, 4  ;;  %s1590_s15 = scalar_lea.hbm %s2152_s1, 16  ;;  %s1584_s17 = int_to_ptr.hbm [resolvable:$true] %s1583_s17 }
  0x3d   : > { %s1585_s26 = scalar_lea.hbm %s1584_s17, 8  ;;  %p1591_p9 = scmp.lt.s32.totalorder %s1584_s17, %s2152_s1 }
  0x3e   : > { %p1586_p2 = scmp.ne.s32.totalorder %s1584_s17, %s1585_s26  ;;  %p1592_p13 = scmp.lt.s32.totalorder %s1590_s15, %s1585_s26 }
  0x40   : > { %p1588_p12 = pnand %p1586_p2, %p1557_p11  ;;  %p1593_p3 = por %p1592_p13, %p1591_p9 }
  0x42   : > { %p1589_p0 = pneg %p1588_p12 }
  0x44   : > { %p1594_p5 = pnand %p1593_p3, %p1589_p0 }
  0x46   : > { %1597 = shalt.err (!%p1594_p5)
}
  0x47   : > { %1365 = dma.hbm_to_vmem [thread:$0]  (!%p1873_p10), %s429_s3, 128, %s431_s24, %s419_s29  }
  0x48   : > { %439 = sbr.rel (%p1822_p8) target bundleno = 2354 (0x932), region = 68  ;;  %s1908_s23 = sand.u32 (!%p1822_p8), 1, %s1683_s22  }
  0x49   : > { %s1911_s13 = sshll.u32 (!%p1822_p8), %s1908_s23, 3  ;;  %s442_s20 = scalar_lea.sflag (!%p1822_p8), [#allocation3], %s1908_s23 }
  0x4a   : > { %s445_s18 = scalar_lea.vmem (!%p1822_p8), [#allocation2], %s1911_s13 }
  0x4d   : > { %1658 = dma.done.wait (%p1809_p4), %s442_s20, 128  }
  0x4e   : > { %1660 = vsyncadd (%p1809_p4), %s442_s20, 4294967168  ;;  %s451_s24 = sand.u32 1, %s1800_s25   ;;  %s455_s29 = scalar_lea.vmem [#allocation5], %s1911_s13 }
  0x4f   : > { %s452_s14 = scalar_lea.sflag [#allocation6], %s451_s24 }
  0x50   : > { %1662 = dma.done.wait (%p1809_p4), %s452_s14, 128  }
  0x51   : > { %1664 = vsyncadd (%p1809_p4), %s452_s14, 4294967168 }
  0x52   : > { %1666 = dma.done.wait (%p53_p1), [#allocation6], 32  }
  0x53   : > { %1668 = vsyncadd (%p53_p1), [#allocation6], 4294967264 }
  0x54   : > { %1670 = dma.done.wait (%p53_p1), [#allocation9], 1024  }
  0x55   : > { %1672 = vsyncadd (%p53_p1), [#allocation9], 4294966272  ;;  %vm553_vm0 = vcmask 261120   ;;  %v1933_v0 = vld [vmem:[%s445_s18] sm:$0xff]  ;;  %v545_v1 = vld [vmem:[%s2153_s2 + $0x30] sm:$0xff]  ;;  %v1698_v21 = vmov 32.0  }
  0x56   : > { %v543_v2 = vld [vmem:[%s2153_s2 + $0x20] sm:$0xff]  ;;  %v597_v3 = vsel %vm553_vm0, %v1933_v0, 0.0  ;;  %569 = vmatpush.msra.mxu1 %v545_v1  ;;  %v541_v4 = vld [vmem:[%s2153_s2 + $0x10] sm:$0xff]  ;;  %s1699_s12 = smov 96   ;;  %v636_v38 = vld [vmem:[%s2155_s4 + $0x18] sm:$0xff]  ;;  %s1700_s28 = smov 88  }
  0x57   : > { %v518_v5 = vld [vmem:[%s455_s29] sm:$0xff]  ;;  %598 = vadd.xlane.f32.xlu0 %v597_v3  ;;  %v539_v7 = vld [vmem:[%s2153_s2] sm:$0xff]  ;;  %656 = vmatpush.msra.mxu2 %v636_v38  ;;  %v634_v43 = vld [vmem:[%s2155_s4 + $0x8] sm:$0xff]  ;;  %s1701_s27 = smov 80   ;;  %s1702_s19 = smov 112   ;;  %vm667_vm9 = vcmask 64512  }
  0x58   : > { %v1308_v6 = vmul.f32 -1.442695, %v518_v5  ;;  %570 = vmatpush.msra.mxu1 %v543_v2  ;;  %v1958_v33 = vld [vmem:[#allocation7] sm:$0x3]  ;;  %v635_v39 = vld [vmem:[%s2155_s4 + $0x10] sm:$0xff]  ;;  %s1703_s3 = smov 120  }
  0x59   : > { %v549_v34 = vperm.slane %v1958_v33, 0  ;;  %657 = vmatpush.msra.mxu2 %v635_v39  ;;  %v633_v44 = vld [vmem:[%s2155_s4] sm:$0xff]  ;;  %s1704_s6 = smov 72   ;;  %s1705_s17 = smov 104  }
  0x5a   : > { %1435 = vpow2.f32 %v1308_v6  ;;  %571 = vmatpush.msra.mxu1 %v541_v4  ;;  %v1431_v56 = vld [vmem:[%s2156_s5] ss:$0 sm:$0xff]  ;;  %s1706_s26 = smov 56   ;;  %s1707_s29 = smov 40  }
  0x5b   : > { %658 = vmatpush.msra.mxu2 %v634_v43  ;;  %s1708_s16 = smov 64   ;;  %s1328_s18 = sshll.u32 %s1800_s25, 3 }
  0x5c   : > { %572 = vmatpush.msra.mxu1 %v539_v7 }
  0x5d   : > { %659 = vmatpush.msra.mxu2 %v633_v44 }
  0x60   : > { %v1436_v8 = vpop.eup %1435 }
  0x61   : > { %v522_v9 = vadd.f32 1.0, %v1436_v8 }
  0x63   : > { %1437 = vrcp.f32 %v522_v9  ;;  %v534_v12 = vand.u32 2147483648, %v522_v9  ;;  %vm528_vm1 = vweird.f32 %v522_v9  ;;  %v532_v14 = vand.u32 2147483647, %v522_v9 }
  0x64   : > { %1439 = vrcp.f32 %v1698_v21 }
  0x65   : > { %v535_v16 = vor.u32 1.1754944e-38, %v534_v12  ;;  %vm533_vm4 = vcmp.eq.f32.partialorder %v532_v14, 8.507059e+37 }
  0x69   : > { %v1438_v10 = vpop.eup %1437 }
  0x6a   : > { %v524_v11 = vmul.f32 %v1438_v10, %v522_v9  ;;  %vm529_vm2 = vweird.f32 %v1438_v10  ;;  %v1440_v22 = vpop.eup %1439 }
  0x6b   : > { %vm530_vm3 = vmor %vm528_vm1, %vm529_vm2  ;;  %v601_v23 = vmul.f32 32.0, %v1440_v22  ;;  %vm605_vm5 = vweird.f32 %v1440_v22 }
  0x6c   : > { %v525_v13 = vsub.f32 1.0, %v524_v11 }
  0x6d   : > { %v602_v24 = vsub.f32 1.0, %v601_v23 }
  0x6e   : > { %v526_v15 = vmul.f32 %v1438_v10, %v525_v13 }
  0x6f   : > { %v603_v25 = vmul.f32 %v1440_v22, %v602_v24 }
  0x70   : > { %v527_v17 = vadd.f32 %v1438_v10, %v526_v15  ;;  %v546_v15 = vld [vmem:[%s2153_s2 + $0x38] sm:$0xff] }
  0x71   : > { %v604_v26 = vadd.f32 %v1440_v22, %v603_v25  ;;  %589 = vmatpush.msrb.mxu1 %v546_v15 }
  0x72   : > { %v531_v18 = vsel %vm530_vm3, %v1438_v10, %v527_v17  ;;  %v542_v17 = vld [vmem:[%s2153_s2 + $0x18] sm:$0xff] }
  0x73   : > { %v536_v19 = vsel %vm533_vm4, %v535_v16, %v531_v18  ;;  %v1953_v27 = vsel %vm605_vm5, %v1440_v22, %v604_v26  ;;  %v544_v16 = vld [vmem:[%s2153_s2 + $0x28] sm:$0xff] }
  0x74   : > { %v1949_v20 = vmul.f32 %v536_v19, %v518_v5  ;;  %590 = vmatpush.msrb.mxu1 %v544_v16  ;;  %v540_v18 = vld [vmem:[%s2153_s2 + $0x8] sm:$0xff] }
  0x76   : > { %1309 = vmatmul.msk.f32.vlgmr.msra.gmra.mxu1 %vm553_vm0, %v1949_v20 }
  0x77   : > { %591 = vmatpush.msrb.mxu1 %v542_v17 }
  0x79   : > { %592 = vmatpush.msrb.mxu1 %v540_v18 }
  0x7e   : > { %1310 = vmatmul.msk.f32.vlgmr.msrb.gmra.mxu1 %vm553_vm0, %v1949_v20 }
  0xca   : > { %v599_v28 = vpop.xlane.xlu0 %598 }
  0xcb   : > { %v607_v29 = vmul.f32 %v1953_v27, %v599_v28 }
  0xcd   : > { %v608_v30 = vsub.f32 %v1933_v0, %v607_v29 }
  0xcf   : > { %v609_v31 = vmul.f32 %v608_v30, %v608_v30 }
  0xd1   : > { %v610_v32 = vsel %vm553_vm0, %v609_v31, 0.0 }
  0xd2   : > { %611 = vadd.xlane.f32.xlu0 %v610_v32 }
  0xf3   : > { %v574_v35 = vpop.f32.mrf.mxu1 }
  0xf4   : > { %v1961_v36 = vadd.f32 %v574_v35, %v549_v34 }
  0xf6   : > { %v626_v37 = vadd.f32 1.0, %v1961_v36 }
  0xf8   : > { %628 = vrot.lane.b32.xlu1 %v626_v37, %s1699_s12 }
 0x145   : > { %v612_v40 = vpop.xlane.xlu0 %611 }
 0x146   : > { %v613_v41 = vmul.f32 %v612_v40, %v1953_v27 }
 0x148   : > { %v614_v42 = vadd.f32 1e-06, %v613_v41 }
 0x14a   : > { %1441 = vrsqrt.f32 %v614_v42  ;;  %vm621_vm6 = vweird.f32 %v614_v42 }
 0x150   : > { %v1442_v45 = vpop.eup %1441 }
 0x151   : > { %v616_v46 = vmul.f32 %v1442_v45, %v614_v42  ;;  %vm622_vm7 = vweird.f32 %v1442_v45 }
 0x152   : > { %vm623_vm8 = vmor %vm621_vm6, %vm622_vm7 }
 0x153   : > { %v617_v47 = vmul.f32 %v1442_v45, %v616_v46 }
 0x155   : > { %v618_v48 = vmul.f32 0.5, %v617_v47 }
 0x157   : > { %v619_v49 = vsub.f32 1.5, %v618_v48 }
 0x159   : > { %v620_v50 = vmul.f32 %v1442_v45, %v619_v49 }
 0x15b   : > { %v624_v51 = vsel %vm623_vm8, %v1442_v45, %v620_v50 }
 0x15c   : > { %v625_v52 = vmul.f32 %v624_v51, %v608_v30 }
 0x16a   : > { %v629_v53 = vpop.permute.xlu1 %628 }
 0x16b   : > { %v631_v54 = vmul.f32 %v629_v53, %v625_v52 }
 0x16d   : > { %v632_v55 = vadd.f32 %v631_v54, %v1961_v36 }
 0x16f   : > { %1311 = vmatmul.msk.f32.vlgmr.msra.gmra.mxu2 %vm553_vm0, %v632_v55 }
 0x1f2   : > { %v661_v57 = vpop.f32.mrf.mxu2 }
 0x1f3   : > { %v1983_v58 = vadd.f32 %v1431_v56, %v661_v57 }
 0x1f5   : > { %745 = vrot.lane.b32.xlu0 %v1983_v58, %s1700_s28  ;;  %824 = vrot.lane.b32.xlu2 %v1983_v58, %s1701_s27  ;;  %s1709_s28 = smov 48   ;;  %s1710_s27 = smov 8  }
 0x1f6   : > { %665 = vrot.lane.b32.xlu1 %v1983_v58, %s1699_s12 }
 0x1fd   : > { %822 = vrot.lane.b32.xlu2 %v1983_v58, %s1702_s19  ;;  %s1711_s19 = smov 24  }
 0x1fe   : > { %743 = vrot.lane.b32.xlu1 %v1983_v58, %s1703_s3  ;;  %s1712_s3 = smov 16  }
 0x205   : > { %903 = vrot.lane.b32.xlu2 %v1983_v58, %s1704_s6 }
 0x206   : > { %901 = vrot.lane.b32.xlu1 %v1983_v58, %s1705_s17 }
 0x24f   : > { %v825_v59 = vpop.permute.xlu2 %824 }
 0x250   : > { %1318 = vmatpush.xpose.msk.msrb.mxu2 %vm667_vm9, %v825_v59 }
 0x257   : > { %v823_v60 = vpop.permute.xlu2 %822 }
 0x258   : > { %1319 = vmatmul.msk.f32.vlgmr.msrb.gmra.mxu2 %vm667_vm9, %v823_v60 }
 0x25f   : > { %v904_v62 = vpop.permute.xlu2 %903 }
 0x267   : > { %v746_v61 = vpop.permute.xlu0 %745 }
 0x268   : > { %v666_v63 = vpop.permute.xlu1 %665  ;;  %1315 = vmatpush.xpose.msk.msra.mxu0 %vm667_vm9, %v746_v61 }
 0x269   : > { %1312 = vmatpush.xpose.msk.msra.mxu3 %vm667_vm9, %v666_v63 }
 0x26c   : > { %1321 = vmatpush.xpose.msk.msrb.mxu0 %vm667_vm9, %v904_v62  ;;  %1313 = vmatmul.msk.f32.vlgmr.msra.gmra.mxu3 %vm667_vm9, %v1983_v58 }
 0x270   : > { %v744_v1 = vpop.permute.xlu1 %743 }
 0x271   : > { %1316 = vmatmul.msk.f32.vlgmr.msra.gmra.mxu0 %vm667_vm9, %v744_v1 }
 0x278   : > { %v902_v2 = vpop.permute.xlu1 %901 }
 0x279   : > { %1322 = vmatmul.msk.f32.vlgmr.msrb.gmra.mxu0 %vm667_vm9, %v902_v2 }
 0x2db   : > { %v847_v3 = vpop.f32.mrf.mxu2 }
 0x2dc   : > { %v850_v4 = vmul.f32 0.35355338, %v847_v3 }
 0x2de   : > { %v851_v5 = vsel %vm667_vm9, %v850_v4, -inf }
 0x2df   : > { %852 = vmax.xlane.f32.xlu0 %v851_v5 }
 0x2ee   : > { %v768_v6 = vpop.f32.mrf.mxu0 }
 0x2ef   : > { %v771_v7 = vmul.f32 0.35355338, %v768_v6  ;;  %v689_v8 = vpop.f32.mrf.mxu3 }
 0x2f0   : > { %v692_v9 = vmul.f32 0.35355338, %v689_v8 }
 0x2f1   : > { %v772_v10 = vsel %vm667_vm9, %v771_v7, -inf }
 0x2f2   : > { %773 = vmax.xlane.f32.xlu1 %v772_v10  ;;  %v693_v11 = vsel %vm667_vm9, %v692_v9, -inf }
 0x2f3   : > { %694 = vmax.xlane.f32.xlu2 %v693_v11  ;;  %796 = vrot.lane.b32.xlu0 %v1983_v58, %s1706_s26  ;;  %s1713_s26 = smov 32  }
 0x2f6   : > { %v926_v12 = vpop.f32.mrf.mxu0 }
 0x2f7   : > { %v929_v13 = vmul.f32 0.35355338, %v926_v12 }
 0x2f9   : > { %v930_v14 = vsel %vm667_vm9, %v929_v13, -inf }
 0x2fb   : > { %931 = vmax.xlane.f32.xlu2 %v930_v14 }
 0x352   : > { %v853_v19 = vpop.xlane.xlu0 %852 }
 0x353   : > { %v854_v21 = vsub.f32 %v850_v4, %v853_v19 }
 0x355   : > { %v855_v22 = vmul.f32 1.442695, %v854_v21 }
 0x357   : > { %1443 = vpow2.f32 %v855_v22 }
 0x35d   : > { %v2021_v23 = vpop.eup %1443 }
 0x35e   : > { %v857_v24 = vsel %vm667_vm9, %v2021_v23, 0.0 }
 0x35f   : > { %858 = vadd.xlane.f32.xlu0 %v857_v24 }
 0x365   : > { %v774_v25 = vpop.xlane.xlu1 %773  ;;  %v797_v26 = vpop.permute.xlu0 %796 }
 0x366   : > { %v775_v28 = vsub.f32 %v771_v7, %v774_v25  ;;  %v695_v29 = vpop.xlane.xlu2 %694  ;;  %817 = vmatpush.msra.mxu1 %v797_v26 }
 0x367   : > { %v696_v30 = vsub.f32 %v692_v9, %v695_v29 }
 0x368   : > { %v776_v31 = vmul.f32 1.442695, %v775_v28 }
 0x369   : > { %v697_v32 = vmul.f32 1.442695, %v696_v30 }
 0x36a   : > { %1445 = vpow2.f32 %v776_v31 }
 0x36b   : > { %1447 = vpow2.f32 %v697_v32 }
 0x36e   : > { %v932_v20 = vpop.xlane.xlu2 %931 }
 0x36f   : > { %v933_v34 = vsub.f32 %v929_v13, %v932_v20 }
 0x370   : > { %v1446_v35 = vpop.eup %1445 }
 0x371   : > { %v2025_v37 = vpop.eup %1447  ;;  %v934_v38 = vmul.f32 1.442695, %v933_v34  ;;  %v778_v39 = vsel %vm667_vm9, %v1446_v35, 0.0  ;;  %v2059_v34 = vpop.f32.mrf.mxu1 }
 0x372   : > { %779 = vadd.xlane.f32.xlu1 %v778_v39  ;;  %v699_v40 = vsel %vm667_vm9, %v2025_v37, 0.0 }
 0x373   : > { %1449 = vpow2.f32 %v934_v38  ;;  %700 = vadd.xlane.f32.xlu2 %v699_v40  ;;  %954 = vrot.lane.b32.xlu0 %v1983_v58, %s1707_s29  ;;  %v1000_v40 = vld [vmem:[#allocation8 + $0x18] sm:$0xff]  ;;  %s2194_s29 = sld [smem:[#allocation27_spill]] }
 0x374   : > { %1020 = vmatpush.msra.mxu2 %v1000_v40  ;;  %v1434_v40 = vld [vmem:[%s2162_s11] ss:$0 sm:$0xff] }
 0x379   : > { %v2031_v41 = vpop.eup %1449 }
 0x37a   : > { %v936_v42 = vsel %vm667_vm9, %v2031_v41, 0.0 }
 0x37b   : > { %937 = vadd.xlane.f32.xlu2 %v936_v42  ;;  %v998_v42 = vld [vmem:[#allocation8 + $0x8] sm:$0xff] }
 0x38b   : > { %717 = vrot.lane.b32.xlu1 %v1983_v58, %s1708_s16 }
 0x393   : > { %875 = vrot.lane.b32.xlu2 %v1983_v58, %s1709_s28  ;;  %s516_s28 = scalar_lea.vmem [#allocation11], %s1911_s13  ;;  %s1633_s13 = scalar_lea.hbm %s2194_s29, 16 }
 0x3d2   : > { %v2038_v43 = vpop.xlane.xlu0 %858 }
 0x3d3   : > { %1451 = vrcp.f32 %v2038_v43  ;;  %v871_v17 = vand.u32 2147483648, %v2038_v43  ;;  %vm865_vm6 = vweird.f32 %v2038_v43  ;;  %v869_v19 = vand.u32 2147483647, %v2038_v43 }
 0x3d5   : > { %v872_v30 = vor.u32 1.1754944e-38, %v871_v17  ;;  %v1113_v17 = vld [vmem:[%s2161_s10 + $0x30] sm:$0xff] }
 0x3d9   : > { %v2041_v47 = vpop.eup %1451 }
 0x3da   : > { %v861_v53 = vmul.f32 %v2041_v47, %v2038_v43  ;;  %vm866_vm4 = vweird.f32 %v2041_v47 }
 0x3db   : > { %vm867_vm8 = vmor %vm865_vm6, %vm866_vm4 }
 0x3dc   : > { %v862_v60 = vsub.f32 1.0, %v861_v53 }
 0x3de   : > { %v863_v7 = vmul.f32 %v2041_v47, %v862_v60 }
 0x3e0   : > { %v864_v16 = vadd.f32 %v2041_v47, %v863_v7  ;;  %v550_v7 = vperm.slane %v1958_v33, 1  ;;  %v1114_v33 = vld [vmem:[%s2161_s10 + $0x38] sm:$0xff] }
 0x3e1   : > { %1131 = vmatpush.msra.mxu0 %v1114_v33 }
 0x3e2   : > { %v868_v26 = vsel %vm867_vm8, %v2041_v47, %v864_v16 }
 0x3e3   : > { %1132 = vmatpush.msra.mxu0 %v1113_v17 }
 0x3e5   : > { %v780_v44 = vpop.xlane.xlu1 %779  ;;  %v955_v45 = vpop.permute.xlu0 %954 }
 0x3e6   : > { %1453 = vrcp.f32 %v780_v44  ;;  %v701_v46 = vpop.xlane.xlu2 %700  ;;  %975 = vmatpush.msrb.mxu1 %v955_v45  ;;  %v792_v55 = vand.u32 2147483648, %v780_v44  ;;  %v790_v58 = vand.u32 2147483647, %v780_v44  ;;  %vm786_vm11 = vweird.f32 %v780_v44 }
 0x3e7   : > { %1455 = vrcp.f32 %v701_v46  ;;  %v713_v1 = vand.u32 2147483648, %v701_v46  ;;  %vm707_vm15 = vweird.f32 %v701_v46  ;;  %v711_v4 = vand.u32 2147483647, %v701_v46 }
 0x3e8   : > { %v793_v62 = vor.u32 1.1754944e-38, %v792_v55  ;;  %vm791_vm14 = vcmp.eq.f32.partialorder %v790_v58, 8.507059e+37 }
 0x3e9   : > { %v714_v10 = vor.u32 1.1754944e-38, %v713_v1  ;;  %vm712_vm2 = vcmp.eq.f32.partialorder %v711_v4, 8.507059e+37 }
 0x3ec   : > { %v1454_v48 = vpop.eup %1453 }
 0x3ed   : > { %v1456_v49 = vpop.eup %1455  ;;  %v782_v50 = vmul.f32 %v1454_v48, %v780_v44  ;;  %vm787_vm10 = vweird.f32 %v1454_v48 }
 0x3ee   : > { %v703_v51 = vmul.f32 %v1456_v49, %v701_v46  ;;  %v938_v52 = vpop.xlane.xlu2 %937  ;;  %vm708_vm12 = vweird.f32 %v1456_v49  ;;  %vm788_vm13 = vmor %vm786_vm11, %vm787_vm10  ;;  %vm870_vm11 = vcmp.eq.f32.partialorder %v869_v19, 8.507059e+37  ;;  %v1111_v19 = vld [vmem:[%s2161_s10 + $0x20] sm:$0xff] }
 0x3ef   : > { %v783_v54 = vsub.f32 1.0, %v782_v50  ;;  %1457 = vrcp.f32 %v938_v52  ;;  %vm709_vm1 = vmor %vm707_vm15, %vm708_vm12  ;;  %v950_v12 = vand.u32 2147483648, %v938_v52  ;;  %v948_v14 = vand.u32 2147483647, %v938_v52 }
 0x3f0   : > { %v704_v56 = vsub.f32 1.0, %v703_v51  ;;  %vm944_vm5 = vweird.f32 %v938_v52  ;;  %v873_v32 = vsel %vm870_vm11, %v872_v30, %v868_v26  ;;  %vm993_vm12 = vcmask 130048   ;;  %v1433_v26 = vld [vmem:[%s2160_s9] ss:$0 sm:$0xff] }
 0x3f1   : > { %v784_v57 = vmul.f32 %v1454_v48, %v783_v54  ;;  %v951_v21 = vor.u32 1.1754944e-38, %v950_v12  ;;  %vm949_vm10 = vcmp.eq.f32.partialorder %v948_v14, 8.507059e+37  ;;  %v874_v20 = vmul.f32 %v2021_v23, %v873_v32  ;;  %v997_v23 = vld [vmem:[#allocation8] sm:$0xff] }
 0x3f2   : > { %v705_v59 = vmul.f32 %v1456_v49, %v704_v56 }
 0x3f3   : > { %v785_v61 = vadd.f32 %v1454_v48, %v784_v57 }
 0x3f4   : > { %v706_v63 = vadd.f32 %v1456_v49, %v705_v59 }
 0x3f5   : > { %v1458_v2 = vpop.eup %1457  ;;  %v789_v3 = vsel %vm788_vm13, %v1454_v48, %v785_v61  ;;  %vm995_vm13 = vcmask 195584  }
 0x3f6   : > { %v794_v5 = vsel %vm791_vm14, %v793_v62, %v789_v3  ;;  %v940_v6 = vmul.f32 %v1458_v2, %v938_v52  ;;  %v710_v9 = vsel %vm709_vm1, %v1456_v49, %v706_v63  ;;  %vm945_vm3 = vweird.f32 %v1458_v2  ;;  %v876_v29 = vpop.permute.xlu2 %875  ;;  %v1432_v49 = vld [vmem:[%s2158_s7] ss:$0 sm:$0xff]  ;;  %v1068_v63 = vld [vmem:[#allocation10 + $0x8] sm:$0xff] }
 0x3f7   : > { %v795_v8 = vmul.f32 %v1446_v35, %v794_v5  ;;  %v715_v15 = vsel %vm712_vm2, %v714_v10, %v710_v9  ;;  %vm946_vm7 = vmor %vm944_vm5, %vm945_vm3  ;;  %v1070_v62 = vld [vmem:[#allocation10 + $0x18] sm:$0xff]  ;;  %v595_v10 = vadd.f32 %v2059_v34, %v550_v7  ;;  %vm1119_vm1 = vcmask 523264  }
 0x3f8   : > { %v941_v11 = vsub.f32 1.0, %v940_v6  ;;  %v716_v24 = vmul.f32 %v2025_v37, %v715_v15 }
 0x3f9   : > { %1317 = vmatmul.msk.f32.vlgmr.msra.gmra.mxu1 %vm667_vm9, %v795_v8 }
 0x3fa   : > { %v942_v13 = vmul.f32 %v1458_v2, %v941_v11 }
 0x3fc   : > { %v943_v18 = vadd.f32 %v1458_v2, %v942_v13  ;;  %v1060_v13 = vadd.f32 1.0, %v595_v10 }
 0x3fd   : > { %v718_v22 = vpop.permute.xlu1 %717 }
 0x3fe   : > { %v947_v25 = vsel %vm946_vm7, %v1458_v2, %v943_v18  ;;  %738 = vmatpush.msrb.mxu3 %v718_v22  ;;  %v1112_v18 = vld [vmem:[%s2161_s10 + $0x28] sm:$0xff]  ;;  %v1109_v22 = vld [vmem:[%s2161_s10 + $0x10] sm:$0xff] }
 0x3ff   : > { %v952_v28 = vsel %vm949_vm10, %v951_v21, %v947_v25  ;;  %1314 = vmatmul.msk.f32.vlgmr.msrb.gmra.mxu3 %vm667_vm9, %v716_v24  ;;  %1133 = vmatpush.msra.mxu0 %v1112_v18  ;;  %v1110_v21 = vld [vmem:[%s2161_s10 + $0x18] sm:$0xff]  ;;  %v1108_v24 = vld [vmem:[%s2161_s10 + $0x8] sm:$0xff]  ;;  %v1107_v25 = vld [vmem:[%s2161_s10] sm:$0xff] }
 0x400   : > { %896 = vmatpush.msra.mxu3 %v876_v29  ;;  %v953_v31 = vmul.f32 %v2031_v41, %v952_v28  ;;  %v999_v41 = vld [vmem:[#allocation8 + $0x10] sm:$0xff] }
 0x401   : > { %1021 = vmatpush.msra.mxu2 %v999_v41  ;;  %1134 = vmatpush.msra.mxu0 %v1111_v19 }
 0x402   : > { %1323 = vmatmul.msk.f32.vlgmr.msrb.gmra.mxu1 %vm667_vm9, %v953_v31  ;;  %1090 = vmatpush.msrb.mxu3 %v1070_v62 }
 0x403   : > { %1022 = vmatpush.msra.mxu2 %v998_v42  ;;  %1135 = vmatpush.msra.mxu0 %v1110_v21 }
 0x405   : > { %1023 = vmatpush.msra.mxu2 %v997_v23  ;;  %1136 = vmatpush.msra.mxu0 %v1109_v22 }
 0x407   : > { %1320 = vmatmul.msk.f32.vlgmr.msra.gmra.mxu3 %vm667_vm9, %v874_v20  ;;  %1137 = vmatpush.msra.mxu0 %v1108_v24 }
 0x409   : > { %1138 = vmatpush.msra.mxu0 %v1107_v25 }
 0x476   : > { %v819_v35 = vpop.f32.mrf.mxu1 }
 0x477   : > { %981 = vrot.lane.b32.xlu1 %v819_v35, %s1710_s27  ;;  %s1167_s27 = sshll.u32 %s516_s28, 4  ;;  %s1168_s27 = int_to_ptr.vmem [resolvable:$true] %s1167_s27 }
 0x47f   : > { %v977_v37 = vpop.f32.mrf.mxu1 }
 0x480   : > { %989 = vrot.lane.b32.xlu0 %v977_v37, %s1711_s19 }
 0x482   : > { %v740_v38 = vpop.f32.mrf.mxu3 }
 0x48a   : > { %v898_v39 = vpop.f32.mrf.mxu3 }
 0x48b   : > { %985 = vrot.lane.b32.xlu2 %v898_v39, %s1712_s3 }
 0x4e5   : > { %v986_v45 = vpop.permute.xlu2 %985 }
 0x4e9   : > { %v982_v43 = vpop.permute.xlu1 %981 }
 0x4ea   : > { %v992_v44 = vsel %vm667_vm9, %v740_v38, %v982_v43 }
 0x4eb   : > { %v994_v47 = vsel %vm993_vm12, %v992_v44, %v986_v45 }
 0x4f2   : > { %v990_v46 = vpop.permute.xlu0 %989 }
 0x4f3   : > { %v996_v48 = vsel %vm995_vm13, %v994_v47, %v990_v46 }
 0x4f4   : > { %1324 = vmatmul.msk.f32.vlgmr.msra.gmra.mxu2 %vm553_vm0, %v996_v48 }
 0x577   : > { %v1025_v50 = vpop.f32.mrf.mxu2 }
 0x578   : > { %v1026_v51 = vadd.f32 %v1432_v49, %v1025_v50 }
 0x57a   : > { %1029 = vrot.lane.b32.xlu1 %v1026_v51, %s1708_s16 }
 0x5ec   : > { %v1030_v52 = vpop.permute.xlu1 %1029 }
 0x5ed   : > { %v1032_v53 = vmul.f32 %v1030_v52, %v1961_v36 }
 0x5ef   : > { %1034 = vrot.lane.b32.xlu2 %v1032_v53, %s1708_s16  ;;  %s1165_s16 = scalar_lea.hbm %s2194_s29, %s1328_s18 }
 0x5f0   : > { %s1169_s19 = sshll.u32 %s1165_s16, 4  ;;  %s1170_s19 = int_to_ptr.hbm [resolvable:$true] %s1169_s19 }
 0x5f1   : > { %s1627_s3 = sshra.s32 %s1170_s19, 4  ;;  %s1628_s3 = int_to_ptr.hbm [resolvable:$true] %s1627_s3 }
 0x5f2   : > { %p1634_p10 = scmp.lt.s32.totalorder %s1628_s3, %s2194_s29 }
 0x5f7   : > { %1063 = vrot.lane.b32.xlu2 %v1961_v36, %s1713_s26  ;;  %v1069_v36 = vld [vmem:[#allocation10 + $0x10] sm:$0xff] }
 0x5f8   : > { %1091 = vmatpush.msrb.mxu3 %v1069_v36 }
 0x5fa   : > { %1092 = vmatpush.msrb.mxu3 %v1068_v63 }
 0x649   : > { %v1035_v54 = vpop.permute.xlu2 %1034 }
 0x64a   : > { %v2072_v55 = vadd.f32 %v1035_v54, %v1933_v0  ;;  %v1067_v0 = vld [vmem:[#allocation10] sm:$0xff] }
 0x64b   : > { %1093 = vmatpush.msrb.mxu3 %v1067_v0 }
 0x64c   : > { %v1038_v56 = vsel %vm553_vm0, %v2072_v55, 0.0 }
 0x64d   : > { %1039 = vadd.xlane.f32.xlu0 %v1038_v56 }
 0x6c0   : > { %v1040_v57 = vpop.xlane.xlu0 %1039 }
 0x6c1   : > { %v1041_v58 = vmul.f32 %v1040_v57, %v1953_v27 }
 0x6c3   : > { %v1042_v59 = vsub.f32 %v2072_v55, %v1041_v58 }
 0x6c5   : > { %v1043_v60 = vmul.f32 %v1042_v59, %v1042_v59 }
 0x6c7   : > { %v1044_v61 = vsel %vm553_vm0, %v1043_v60, 0.0 }
 0x6c8   : > { %1045 = vadd.xlane.f32.xlu1 %v1044_v61 }
 0x73b   : > { %v1046_v1 = vpop.xlane.xlu1 %1045 }
 0x73c   : > { %v1047_v2 = vmul.f32 %v1046_v1, %v1953_v27  ;;  %v1064_v27 = vpop.permute.xlu2 %1063 }
 0x73e   : > { %v1048_v3 = vadd.f32 1e-06, %v1047_v2 }
 0x740   : > { %1459 = vrsqrt.f32 %v1048_v3  ;;  %vm1055_vm14 = vweird.f32 %v1048_v3 }
 0x746   : > { %v1460_v4 = vpop.eup %1459 }
 0x747   : > { %v1050_v5 = vmul.f32 %v1460_v4, %v1048_v3  ;;  %vm1056_vm9 = vweird.f32 %v1460_v4 }
 0x748   : > { %vm1057_vm15 = vmor %vm1055_vm14, %vm1056_vm9 }
 0x749   : > { %v1051_v6 = vmul.f32 %v1460_v4, %v1050_v5 }
 0x74b   : > { %v1052_v8 = vmul.f32 0.5, %v1051_v6 }
 0x74d   : > { %v1053_v9 = vsub.f32 1.5, %v1052_v8 }
 0x74f   : > { %v1054_v11 = vmul.f32 %v1460_v4, %v1053_v9 }
 0x751   : > { %v1058_v12 = vsel %vm1057_vm15, %v1460_v4, %v1054_v11 }
 0x752   : > { %v1059_v14 = vmul.f32 %v1058_v12, %v1042_v59 }
 0x754   : > { %v1061_v15 = vmul.f32 %v1060_v13, %v1059_v14 }
 0x756   : > { %v1066_v16 = vadd.f32 %v1064_v27, %v1061_v15 }
 0x758   : > { %1325 = vmatmul.msk.f32.vlgmr.msrb.gmra.mxu3 %vm553_vm0, %v1066_v16 }
 0x7db   : > { %v1095_v28 = vpop.f32.mrf.mxu3 }
 0x7dc   : > { %v1096_v29 = vadd.f32 %v1433_v26, %v1095_v28 }
 0x7de   : > { %v1098_v30 = vmul.f32 %v1096_v29, %v1096_v29 }
 0x7e0   : > { %v1099_v31 = vmul.f32 %v1098_v30, %v1096_v29 }
 0x7e2   : > { %v1100_v32 = vmul.f32 0.044715, %v1099_v31 }
 0x7e4   : > { %v1101_v20 = vadd.f32 %v1100_v32, %v1096_v29 }
 0x7e6   : > { %v1102_v34 = vmul.f32 0.7978846, %v1101_v20 }
 0x7e8   : > { %1461 = vtanh.f32 %v1102_v34 }
 0x7ee   : > { %v1462_v35 = vpop.eup %1461 }
 0x7ef   : > { %v1104_v37 = vadd.f32 1.0, %v1462_v35 }
 0x7f1   : > { %v1105_v38 = vmul.f32 0.5, %v1104_v37 }
 0x7f3   : > { %v1106_v39 = vmul.f32 %v1105_v38, %v1096_v29 }
 0x7f5   : > { %1326 = vmatmul.msk.f32.vlgmr.msra.gmra.mxu0 %vm1119_vm1, %v1106_v39 }
 0x872   : > { %v1140_v41 = vpop.f32.mrf.mxu0 }
 0x873   : > { %v1141_v42 = vadd.f32 %v1434_v40, %v1140_v41 }
 0x875   : > { %1144 = vrot.lane.b32.xlu2 %v1141_v42, %s1713_s26  ;;  %s1155_s26 = scalar_lea.sflag [#allocation4], %s1908_s23 }
 0x8cf   : > { %v1145_v23 = vpop.permute.xlu2 %1144 }
 0x8d0   : > { %v1147_v43 = vmul.f32 %v1145_v23, %v595_v10 }
 0x8d2   : > { %1149 = vrot.lane.b32.xlu2 %v1147_v43, %s1699_s12  ;;  %s1629_s12 = scalar_lea.hbm %s1628_s3, 8 }
 0x8d3   : > { %p1630_p1 = scmp.ne.s32.totalorder %s1628_s3, %s1629_s12  ;;  %p1635_p11 = scmp.lt.s32.totalorder %s1633_s13, %s1629_s12 }
 0x8d5   : > { %p1631_p4 = pnand %p1630_p1, %p1862_p7  ;;  %p1636_p2 = por %p1635_p11, %p1634_p10 }
 0x8d7   : > { %p1632_p8 = pneg %p1631_p4 }
 0x8d9   : > { %p1637_p12 = pnand %p1636_p2, %p1632_p8 }
 0x92c   : > { %v1150_v44 = vpop.permute.xlu2 %1149 }
 0x92d   : > { %v1152_v45 = vadd.f32 %v1150_v44, %v2072_v55 }
 0x92f   : > { %1153 = vst.msk [vmem:[%s516_s28] sm:$0xff] %vm553_vm0, %v1152_v45 }
 0x930   : > { %1640 = shalt.err (!%p1637_p12)
}
 0x931   : > { %1347 = dma.vmem_to_hbm [thread:$0]  (%p1862_p7), %s1168_s27, 128, %s1170_s19, %s1155_s26  }
 0x932 PF: > { %s2195_s23 = sld [smem:[#allocation17_spill]] }
 0x933   : > { %s2197_s8 = sld [smem:[#allocation19_spill]] }
 0x938   : > { %s1181_s21 = sand.u32 1, %s2195_s23  }
 0x939   : > { %p2198_p0 = scmp.ge.s32.totalorder %s2197_s8, 2  ;;  %s1182_s18 = scalar_lea.sflag [#allocation4], %s1181_s21 }
 0x93b   : > { %p1367_p9 = pnand %p2198_p0, %p1814_p6 }
 0x93d   : > { %p1368_p13 = pneg %p1367_p9 }
 0x93f   : > { %1674 = dma.done.wait (%p1368_p13), %s1182_s18, 128  }
 0x940   : > { %1676 = vsyncadd (%p1368_p13), %s1182_s18, 4294967168  ;;  %s2199_s24 = sld [smem:[#allocation21_spill]]  ;;  %s2202_s21 = smov %s1683_s22 }
 0x941   : > { %s2200_s14 = sld [smem:[#allocation18_spill]] }
 0x942   : > { %s2201_s23 = sld [smem:[#allocation22_spill]] }
 0x946   : > { %p29_p3 = scmp.ge.s32.totalorder %s2199_s24, 4  }
 0x947   : > { %s2203_s22 = smov %s2200_s14 }
 0x948   :  { %31 = sbr.rel (!%p29_p3) target bundleno = 13 (0xd), region = 138 }
 0x94d   :  { %1188 = vsyncpa [#allocation3], 1 }
 0x94e   :  { %1190 = vsyncpa [#allocation3 + $0x1], 1 }
 0x94f   :  { %1191 = vsyncpa [#allocation6], 1 }
 0x950   :  { %1193 = vsyncpa [#allocation6 + $0x1], 1 }
 0x951   :  { %1194 = vsyncpa [#allocation9], 1 }
 0x952   :  { %1195 = vsyncpa [#allocation4], 1 }
 0x953   :  { %1197 = vsyncpa [#allocation4 + $0x1], 1 }

</bundles_post_ra>
